<compile_context>
chip_gen: v5e
topology: v5e:2x2
jax: 0.10.0
libtpu: 0.0.40
codegen_flags: <defaults>
</compile_context>

<pallas_src>
import functools

import jax
import jax.numpy as jnp
from jax import lax
from jax.experimental import pallas as pl
from jax.experimental.pallas import tpu as pltpu


# ----------------------------- Pallas kernel --------------------------------
def _downscale_conv_kernel(xt_ref, wb_ref, b_ref, o_ref, *, tr, wo_pad, c4, cout):
    """One (TR x Wo_pad)-pixel tile of Conv2d(k=5, s=2, p=2) + bias + LeakyReLU(0.1).

    xt_ref: (TR+2, Ws, C4)   bf16  space-to-depth input rows (Ws = Wo_pad + 2)
    wb_ref: (9, C4, Cout)    bf16  weights per (dh, dw) tap pair (VMEM resident)
    b_ref:  (1, Cout)        f32   bias (VMEM resident)
    o_ref:  (TR*Wo_pad, Cout)      output pixels (row-major == NHWC bytes)
    """
    m = tr * wo_pad
    acc = jnp.zeros((m, cout), jnp.float32)
    # 5x5 stride-2 conv over the original image == 3x3 stride-1 conv over the
    # space-to-depth input: nine accumulated MXU matmuls, f32 accumulation.
    for dh in range(3):
        for dw in range(3):
            win = xt_ref[dh:dh + tr, dw:dw + wo_pad, :]          # (TR, Wo_pad, C4)
            lhs = win.reshape(m, c4)      # layout-preserving since Wo_pad % 8 == 0
            acc = acc + jnp.dot(lhs, wb_ref[dh * 3 + dw],
                                preferred_element_type=jnp.float32)
    acc = acc + b_ref[...]                                       # (1, Cout) broadcast
    acc = jnp.where(acc >= 0, acc, 0.1 * acc)                    # LeakyReLU(0.1)
    o_ref[...] = acc.astype(o_ref.dtype)


# ------------------------------- helpers -------------------------------------
def _round_up(x, m):
    return (x + m - 1) // m * m


def _vmem_limit_bytes():
    """Scoped-VMEM limit sized from the actual chip (v5e/v6e 128 MiB, v7x 64 MiB)."""
    try:
        cap = pltpu.get_tpu_info().vmem_capacity_bytes
    except Exception:
        cap = 64 * 1024 * 1024                      # conservative (v7x-sized) fallback
    return min(int(cap * 3 // 4), 96 * 1024 * 1024)


def _choose_row_tile(ho, wo_pad, ws, c4, n_batch, out_bytes, vmem_limit):
    """Output rows per grid step.

    Large enough to amortize the ~0.35us/step overhead (target ~8k output
    pixels per step), small enough that the double-buffered streamed tiles fit
    the per-chip VMEM budget, and biased so the (N, T) grid keeps >= 2 steps
    (v7x has 2 TensorCores; a 1-step grid would idle one of them).
    """
    budget = max(8 * 1024 * 1024, min(32 * 1024 * 1024, vmem_limit // 3))
    # double-buffered bytes per output row: bf16 input row + lane-padded output row
    per_row = 2 * (ws * c4 * 2) + 2 * (wo_pad * 128 * out_bytes)
    tr_vmem = max(1, budget // per_row)
    tr_target = max(1, 8192 // wo_pad)
    tr = max(1, min(ho, tr_vmem, tr_target))
    if n_batch * (-(-ho // tr)) < 2 and ho >= 2:    # keep >= 2 grid steps if possible
        tr = -(-ho // 2)
    best = max(d for d in range(1, tr + 1) if ho % d == 0)
    if best * 2 >= tr:                              # prefer an even divisor of Ho
        tr = best
    return tr


# ------------------------------ one Downscale --------------------------------
def downscale_pallas_nhwc(x, w_oihw, b, kernel_size=5, stride=2, padding=2,
                          out_dtype=jnp.bfloat16):
    """Conv2d(k=5, stride=2, pad=2) + LeakyReLU(0.1), NHWC in / NHWC out."""
    assert kernel_size == 5 and stride == 2 and padding == 2
    n, h, w, cin = x.shape
    cout = w_oihw.shape[0]
    ho = (h + 2 * padding - kernel_size) // stride + 1
    wo = (w + 2 * padding - kernel_size) // stride + 1
    c4 = 4 * cin

    wo_pad = _round_up(wo, 8)          # keeps the in-kernel collapse reshape layout-friendly
    ws = wo_pad + 2
    vmem_limit = _vmem_limit_bytes()
    out_bytes = jnp.dtype(out_dtype).itemsize
    tr = _choose_row_tile(ho, wo_pad, ws, c4, n, out_bytes, vmem_limit)
    t = -(-ho // tr)
    ho_pad = t * tr
    hs = ho_pad + 2
    m_t = tr * wo_pad

    # --- single input-sized rearrangement (bf16): zero-pad + 2x2 space-to-depth
    # --- + halo-duplicated row tiles.  This replaces the old 6.25x im2col slab.
    hp, wp = 2 * ho_pad + 4, 2 * wo_pad + 4
    xp = jnp.pad(x.astype(jnp.bfloat16),
                 ((0, 0),
                  (padding, hp - padding - h),
                  (padding, wp - padding - w),
                  (0, 0)))
    xs = xp.reshape(n, hs, 2, ws, 2, cin).transpose(0, 1, 3, 2, 4, 5).reshape(n, hs, ws, c4)
    xt = jnp.stack([xs[:, i * tr:i * tr + tr + 2] for i in range(t)], axis=1)  # (n,t,tr+2,ws,c4)

    # --- weights regrouped per (dh, dw) tap pair: (Cout, Cin, 5, 5) -> (9, 4*Cin, Cout)
    wt = jnp.transpose(w_oihw, (2, 3, 1, 0))                     # (kh, kw, Cin, Cout)
    wt = jnp.pad(wt, ((0, 1), (0, 1), (0, 0), (0, 0)))           # kh/kw == 5 taps are zero
    wt = wt.reshape(3, 2, 3, 2, cin, cout).transpose(0, 2, 1, 3, 4, 5)
    wb = wt.reshape(9, c4, cout).astype(jnp.bfloat16)
    bmat = b.astype(jnp.float32).reshape(1, cout)

    kernel = functools.partial(_downscale_conv_kernel,
                               tr=tr, wo_pad=wo_pad, c4=c4, cout=cout)

    out = pl.pallas_call(
        kernel,
        grid=(n, t),
        in_specs=[
            pl.BlockSpec((None, None, tr + 2, ws, c4), lambda i, j: (i, j, 0, 0, 0)),
            pl.BlockSpec((9, c4, cout), lambda i, j: (0, 0, 0)),     # weights: resident
            pl.BlockSpec((1, cout), lambda i, j: (0, 0)),            # bias: resident
        ],
        out_specs=pl.BlockSpec((None, None, m_t, cout), lambda i, j: (i, j, 0, 0)),
        out_shape=jax.ShapeDtypeStruct((n, t, m_t, cout), out_dtype),
        compiler_params=pltpu.CompilerParams(
            dimension_semantics=("parallel", "parallel"),            # megacore-friendly
            vmem_limit_bytes=vmem_limit),
    )(xt, wb, bmat)

    # (n, t, tr*wo_pad, cout) is row-major identical to (n, ho_pad, wo_pad, cout)
    out = out.reshape(n, ho_pad, wo_pad, cout)[:, :ho, :wo, :]
    return out


# ---------------------------- DownscaleBlock ---------------------------------
def init_downscale_block(key, in_ch, ch, n_downscales, kernel_size):
    """Deterministic init matching nn.Conv2d default (uniform +/- 1/sqrt(fan_in))."""
    params = []
    last_ch = in_ch
    for i in range(n_downscales):
        cur_ch = ch * min(2 ** i, 8)
        key, wk, bk = jax.random.split(key, 3)
        fan_in = last_ch * kernel_size * kernel_size
        bound = 1.0 / (fan_in ** 0.5)
        w = jax.random.uniform(wk, (cur_ch, last_ch, kernel_size, kernel_size),
                               jnp.float32, -bound, bound)
        b = jax.random.uniform(bk, (cur_ch,), jnp.float32, -bound, bound)
        params.append((w, b))
        last_ch = cur_ch
    return params


def downscale_block_forward(params, x_nchw, kernel_size=5):
    # NCHW -> NHWC once; stay channels-last across all layers.
    x = jnp.transpose(x_nchw, (0, 2, 3, 1))
    n_layers = len(params)
    for li, (w, b) in enumerate(params):
        last = li == n_layers - 1
        x = downscale_pallas_nhwc(
            x, w, b, kernel_size=kernel_size,
            out_dtype=jnp.float32 if last else jnp.bfloat16)
    return jnp.transpose(x, (0, 3, 1, 2))    # back to NCHW once at the end


# ------------------------------ references -----------------------------------
def downscale_block_reference(params, x_nchw, kernel_size=5, quantize_bf16=True):
    """lax.conv reference.  quantize_bf16=True mirrors the kernel's bf16 MXU
    operands (f32 accumulation); False is pure f32."""
    x = x_nchw.astype(jnp.float32)
    for (w, b) in params:
        if quantize_bf16:
            xc = x.astype(jnp.bfloat16).astype(jnp.float32)
            wc = w.astype(jnp.bfloat16).astype(jnp.float32)
        else:
            xc, wc = x, w.astype(jnp.float32)
        y = lax.conv_general_dilated(
            xc, wc, window_strides=(2, 2), padding=((2, 2), (2, 2)),
            dimension_numbers=('NCHW', 'OIHW', 'NCHW'),
            precision=lax.Precision.HIGHEST)
        y = y + b.reshape(1, -1, 1, 1)
        x = jnp.where(y >= 0, y, 0.1 * y)
    return x


# --------------------------------- main ---------------------------------------
if __name__ == "__main__":
    key = jax.random.PRNGKey(0)
    key, xk = jax.random.split(key)

    in_ch, ch, n_downscales, kernel_size = 3, 4, 3, 5
    x = jax.random.normal(xk, (2, in_ch, 16, 16), jnp.float32)  # NCHW

    params = init_downscale_block(key, in_ch, ch, n_downscales, kernel_size)

    fwd = jax.jit(lambda p, xx: downscale_block_forward(p, xx, kernel_size))
    out = jax.block_until_ready(fwd(params, x))

    ref_bf16 = jax.block_until_ready(
        downscale_block_reference(params, x, kernel_size, quantize_bf16=True))
    ref_f32 = jax.block_until_ready(
        downscale_block_reference(params, x, kernel_size, quantize_bf16=False))

    assert out.shape == ref_bf16.shape, (out.shape, ref_bf16.shape)
    assert out.dtype == jnp.float32, out.dtype
    # Tight check against the matched (bf16-operand, f32-accumulate) reference.
    assert jnp.allclose(out, ref_bf16, atol=5e-3, rtol=5e-3), \
        float(jnp.max(jnp.abs(out - ref_bf16)))
    # Loose sanity check against the pure-f32 reference (catches structural
    # errors in taps / stride / padding / layer chaining).
    assert jnp.allclose(out, ref_f32, atol=1e-1, rtol=1e-1), \
        float(jnp.max(jnp.abs(out - ref_f32)))

    print("KERNEL_OK")
</pallas_src>

<mosaic_0001>
module attributes {stable_mosaic.version = 11 : i64} {
  func.func @_downscale_conv_kernel(%arg0: i32, %arg1: i32, %arg2: memref<1x1x10x10x12xbf16, #tpu.memory_space<vmem>>, %arg3: memref<9x12x4xbf16, #tpu.memory_space<vmem>>, %arg4: memref<1x4xf32, #tpu.memory_space<vmem>>, %arg5: memref<1x1x64x4xbf16, #tpu.memory_space<vmem>>) attributes {dimension_semantics = [#tpu.dimension_semantics<parallel>, #tpu.dimension_semantics<parallel>], iteration_bounds = array<i64: 2, 1>, scalar_prefetch = 0 : i64, scratch_operands = 0 : i64, tpu.core_type = #tpu.core_type<tc>, window_params = [{transform_indices = @transform_0, window_bounds = array<i64: 1, 1, 10, 10, 12>}, {pipeline_mode = #tpu.pipeline_mode<synchronous>, transform_indices = @transform_1, window_bounds = array<i64: 9, 12, 4>}, {pipeline_mode = #tpu.pipeline_mode<synchronous>, transform_indices = @transform_2, window_bounds = array<i64: 1, 4>}, {transform_indices = @transform_3, window_bounds = array<i64: 1, 1, 64, 4>}]} {
    %cst = arith.constant 0.000000e+00 : f32
    %0 = vector.broadcast %cst : f32 to vector<64x4xf32>
    %c0 = arith.constant 0 : index
    %c0_0 = arith.constant 0 : index
    %c0_1 = arith.constant 0 : index
    %c0_2 = arith.constant 0 : index
    %c0_3 = arith.constant 0 : index
    %1 = vector.load %arg2[%c0, %c0_0, %c0_1, %c0_2, %c0_3] : memref<1x1x10x10x12xbf16, #tpu.memory_space<vmem>>, vector<1x1x8x8x12xbf16>
    %2 = vector.shape_cast %1 : vector<1x1x8x8x12xbf16> to vector<8x8x12xbf16>
    %3 = vector.shape_cast %2 : vector<8x8x12xbf16> to vector<64x12xbf16>
    %c0_4 = arith.constant 0 : index
    %c0_5 = arith.constant 0 : index
    %c0_6 = arith.constant 0 : index
    %4 = vector.load %arg3[%c0_4, %c0_5, %c0_6] : memref<9x12x4xbf16, #tpu.memory_space<vmem>>, vector<1x12x4xbf16>
    %5 = vector.shape_cast %4 : vector<1x12x4xbf16> to vector<12x4xbf16>
    %cst_7 = arith.constant dense<0.000000e+00> : vector<64x4xf32>
    %6 = tpu.matmul %3, %5, %cst_7 {dimension_numbers = #tpu.dot_dimension_numbers<[1], [0], [0], [1], [0, 0, 1, 1], [], []>} : vector<64x12xbf16>, vector<12x4xbf16>, vector<64x4xf32> -> vector<64x4xf32>
    %7 = arith.addf %0, %6 : vector<64x4xf32>
    %c0_8 = arith.constant 0 : index
    %c0_9 = arith.constant 0 : index
    %c0_10 = arith.constant 0 : index
    %c1 = arith.constant 1 : index
    %c0_11 = arith.constant 0 : index
    %8 = vector.load %arg2[%c0_8, %c0_9, %c0_10, %c1, %c0_11] : memref<1x1x10x10x12xbf16, #tpu.memory_space<vmem>>, vector<1x1x8x8x12xbf16>
    %9 = vector.shape_cast %8 : vector<1x1x8x8x12xbf16> to vector<8x8x12xbf16>
    %10 = vector.shape_cast %9 : vector<8x8x12xbf16> to vector<64x12xbf16>
    %c1_12 = arith.constant 1 : index
    %c0_13 = arith.constant 0 : index
    %c0_14 = arith.constant 0 : index
    %11 = vector.load %arg3[%c1_12, %c0_13, %c0_14] : memref<9x12x4xbf16, #tpu.memory_space<vmem>>, vector<1x12x4xbf16>
    %12 = vector.shape_cast %11 : vector<1x12x4xbf16> to vector<12x4xbf16>
    %cst_15 = arith.constant dense<0.000000e+00> : vector<64x4xf32>
    %13 = tpu.matmul %10, %12, %cst_15 {dimension_numbers = #tpu.dot_dimension_numbers<[1], [0], [0], [1], [0, 0, 1, 1], [], []>} : vector<64x12xbf16>, vector<12x4xbf16>, vector<64x4xf32> -> vector<64x4xf32>
    %14 = arith.addf %7, %13 : vector<64x4xf32>
    %c0_16 = arith.constant 0 : index
    %c0_17 = arith.constant 0 : index
    %c0_18 = arith.constant 0 : index
    %c2 = arith.constant 2 : index
    %c0_19 = arith.constant 0 : index
    %15 = vector.load %arg2[%c0_16, %c0_17, %c0_18, %c2, %c0_19] : memref<1x1x10x10x12xbf16, #tpu.memory_space<vmem>>, vector<1x1x8x8x12xbf16>
    %16 = vector.shape_cast %15 : vector<1x1x8x8x12xbf16> to vector<8x8x12xbf16>
    %17 = vector.shape_cast %16 : vector<8x8x12xbf16> to vector<64x12xbf16>
    %c2_20 = arith.constant 2 : index
    %c0_21 = arith.constant 0 : index
    %c0_22 = arith.constant 0 : index
    %18 = vector.load %arg3[%c2_20, %c0_21, %c0_22] : memref<9x12x4xbf16, #tpu.memory_space<vmem>>, vector<1x12x4xbf16>
    %19 = vector.shape_cast %18 : vector<1x12x4xbf16> to vector<12x4xbf16>
    %cst_23 = arith.constant dense<0.000000e+00> : vector<64x4xf32>
    %20 = tpu.matmul %17, %19, %cst_23 {dimension_numbers = #tpu.dot_dimension_numbers<[1], [0], [0], [1], [0, 0, 1, 1], [], []>} : vector<64x12xbf16>, vector<12x4xbf16>, vector<64x4xf32> -> vector<64x4xf32>
    %21 = arith.addf %14, %20 : vector<64x4xf32>
    %c0_24 = arith.constant 0 : index
    %c0_25 = arith.constant 0 : index
    %c1_26 = arith.constant 1 : index
    %c0_27 = arith.constant 0 : index
    %c0_28 = arith.constant 0 : index
    %22 = vector.load %arg2[%c0_24, %c0_25, %c1_26, %c0_27, %c0_28] : memref<1x1x10x10x12xbf16, #tpu.memory_space<vmem>>, vector<1x1x8x8x12xbf16>
    %23 = vector.shape_cast %22 : vector<1x1x8x8x12xbf16> to vector<8x8x12xbf16>
    %24 = vector.shape_cast %23 : vector<8x8x12xbf16> to vector<64x12xbf16>
    %c3 = arith.constant 3 : index
    %c0_29 = arith.constant 0 : index
    %c0_30 = arith.constant 0 : index
    %25 = vector.load %arg3[%c3, %c0_29, %c0_30] : memref<9x12x4xbf16, #tpu.memory_space<vmem>>, vector<1x12x4xbf16>
    %26 = vector.shape_cast %25 : vector<1x12x4xbf16> to vector<12x4xbf16>
    %cst_31 = arith.constant dense<0.000000e+00> : vector<64x4xf32>
    %27 = tpu.matmul %24, %26, %cst_31 {dimension_numbers = #tpu.dot_dimension_numbers<[1], [0], [0], [1], [0, 0, 1, 1], [], []>} : vector<64x12xbf16>, vector<12x4xbf16>, vector<64x4xf32> -> vector<64x4xf32>
    %28 = arith.addf %21, %27 : vector<64x4xf32>
    %c0_32 = arith.constant 0 : index
    %c0_33 = arith.constant 0 : index
    %c1_34 = arith.constant 1 : index
    %c1_35 = arith.constant 1 : index
    %c0_36 = arith.constant 0 : index
    %29 = vector.load %arg2[%c0_32, %c0_33, %c1_34, %c1_35, %c0_36] : memref<1x1x10x10x12xbf16, #tpu.memory_space<vmem>>, vector<1x1x8x8x12xbf16>
    %30 = vector.shape_cast %29 : vector<1x1x8x8x12xbf16> to vector<8x8x12xbf16>
    %31 = vector.shape_cast %30 : vector<8x8x12xbf16> to vector<64x12xbf16>
    %c4 = arith.constant 4 : index
    %c0_37 = arith.constant 0 : index
    %c0_38 = arith.constant 0 : index
    %32 = vector.load %arg3[%c4, %c0_37, %c0_38] : memref<9x12x4xbf16, #tpu.memory_space<vmem>>, vector<1x12x4xbf16>
    %33 = vector.shape_cast %32 : vector<1x12x4xbf16> to vector<12x4xbf16>
    %cst_39 = arith.constant dense<0.000000e+00> : vector<64x4xf32>
    %34 = tpu.matmul %31, %33, %cst_39 {dimension_numbers = #tpu.dot_dimension_numbers<[1], [0], [0], [1], [0, 0, 1, 1], [], []>} : vector<64x12xbf16>, vector<12x4xbf16>, vector<64x4xf32> -> vector<64x4xf32>
    %35 = arith.addf %28, %34 : vector<64x4xf32>
    %c0_40 = arith.constant 0 : index
    %c0_41 = arith.constant 0 : index
    %c1_42 = arith.constant 1 : index
    %c2_43 = arith.constant 2 : index
    %c0_44 = arith.constant 0 : index
    %36 = vector.load %arg2[%c0_40, %c0_41, %c1_42, %c2_43, %c0_44] : memref<1x1x10x10x12xbf16, #tpu.memory_space<vmem>>, vector<1x1x8x8x12xbf16>
    %37 = vector.shape_cast %36 : vector<1x1x8x8x12xbf16> to vector<8x8x12xbf16>
    %38 = vector.shape_cast %37 : vector<8x8x12xbf16> to vector<64x12xbf16>
    %c5 = arith.constant 5 : index
    %c0_45 = arith.constant 0 : index
    %c0_46 = arith.constant 0 : index
    %39 = vector.load %arg3[%c5, %c0_45, %c0_46] : memref<9x12x4xbf16, #tpu.memory_space<vmem>>, vector<1x12x4xbf16>
    %40 = vector.shape_cast %39 : vector<1x12x4xbf16> to vector<12x4xbf16>
    %cst_47 = arith.constant dense<0.000000e+00> : vector<64x4xf32>
    %41 = tpu.matmul %38, %40, %cst_47 {dimension_numbers = #tpu.dot_dimension_numbers<[1], [0], [0], [1], [0, 0, 1, 1], [], []>} : vector<64x12xbf16>, vector<12x4xbf16>, vector<64x4xf32> -> vector<64x4xf32>
    %42 = arith.addf %35, %41 : vector<64x4xf32>
    %c0_48 = arith.constant 0 : index
    %c0_49 = arith.constant 0 : index
    %c2_50 = arith.constant 2 : index
    %c0_51 = arith.constant 0 : index
    %c0_52 = arith.constant 0 : index
    %43 = vector.load %arg2[%c0_48, %c0_49, %c2_50, %c0_51, %c0_52] : memref<1x1x10x10x12xbf16, #tpu.memory_space<vmem>>, vector<1x1x8x8x12xbf16>
    %44 = vector.shape_cast %43 : vector<1x1x8x8x12xbf16> to vector<8x8x12xbf16>
    %45 = vector.shape_cast %44 : vector<8x8x12xbf16> to vector<64x12xbf16>
    %c6 = arith.constant 6 : index
    %c0_53 = arith.constant 0 : index
    %c0_54 = arith.constant 0 : index
    %46 = vector.load %arg3[%c6, %c0_53, %c0_54] : memref<9x12x4xbf16, #tpu.memory_space<vmem>>, vector<1x12x4xbf16>
    %47 = vector.shape_cast %46 : vector<1x12x4xbf16> to vector<12x4xbf16>
    %cst_55 = arith.constant dense<0.000000e+00> : vector<64x4xf32>
    %48 = tpu.matmul %45, %47, %cst_55 {dimension_numbers = #tpu.dot_dimension_numbers<[1], [0], [0], [1], [0, 0, 1, 1], [], []>} : vector<64x12xbf16>, vector<12x4xbf16>, vector<64x4xf32> -> vector<64x4xf32>
    %49 = arith.addf %42, %48 : vector<64x4xf32>
    %c0_56 = arith.constant 0 : index
    %c0_57 = arith.constant 0 : index
    %c2_58 = arith.constant 2 : index
    %c1_59 = arith.constant 1 : index
    %c0_60 = arith.constant 0 : index
    %50 = vector.load %arg2[%c0_56, %c0_57, %c2_58, %c1_59, %c0_60] : memref<1x1x10x10x12xbf16, #tpu.memory_space<vmem>>, vector<1x1x8x8x12xbf16>
    %51 = vector.shape_cast %50 : vector<1x1x8x8x12xbf16> to vector<8x8x12xbf16>
    %52 = vector.shape_cast %51 : vector<8x8x12xbf16> to vector<64x12xbf16>
    %c7 = arith.constant 7 : index
    %c0_61 = arith.constant 0 : index
    %c0_62 = arith.constant 0 : index
    %53 = vector.load %arg3[%c7, %c0_61, %c0_62] : memref<9x12x4xbf16, #tpu.memory_space<vmem>>, vector<1x12x4xbf16>
    %54 = vector.shape_cast %53 : vector<1x12x4xbf16> to vector<12x4xbf16>
    %cst_63 = arith.constant dense<0.000000e+00> : vector<64x4xf32>
    %55 = tpu.matmul %52, %54, %cst_63 {dimension_numbers = #tpu.dot_dimension_numbers<[1], [0], [0], [1], [0, 0, 1, 1], [], []>} : vector<64x12xbf16>, vector<12x4xbf16>, vector<64x4xf32> -> vector<64x4xf32>
    %56 = arith.addf %49, %55 : vector<64x4xf32>
    %c0_64 = arith.constant 0 : index
    %c0_65 = arith.constant 0 : index
    %c2_66 = arith.constant 2 : index
    %c2_67 = arith.constant 2 : index
    %c0_68 = arith.constant 0 : index
    %57 = vector.load %arg2[%c0_64, %c0_65, %c2_66, %c2_67, %c0_68] : memref<1x1x10x10x12xbf16, #tpu.memory_space<vmem>>, vector<1x1x8x8x12xbf16>
    %58 = vector.shape_cast %57 : vector<1x1x8x8x12xbf16> to vector<8x8x12xbf16>
    %59 = vector.shape_cast %58 : vector<8x8x12xbf16> to vector<64x12xbf16>
    %c8 = arith.constant 8 : index
    %c0_69 = arith.constant 0 : index
    %c0_70 = arith.constant 0 : index
    %60 = vector.load %arg3[%c8, %c0_69, %c0_70] : memref<9x12x4xbf16, #tpu.memory_space<vmem>>, vector<1x12x4xbf16>
    %61 = vector.shape_cast %60 : vector<1x12x4xbf16> to vector<12x4xbf16>
    %cst_71 = arith.constant dense<0.000000e+00> : vector<64x4xf32>
    %62 = tpu.matmul %59, %61, %cst_71 {dimension_numbers = #tpu.dot_dimension_numbers<[1], [0], [0], [1], [0, 0, 1, 1], [], []>} : vector<64x12xbf16>, vector<12x4xbf16>, vector<64x4xf32> -> vector<64x4xf32>
    %63 = arith.addf %56, %62 : vector<64x4xf32>
    %c0_72 = arith.constant 0 : index
    %c0_73 = arith.constant 0 : index
    %64 = vector.load %arg4[%c0_72, %c0_73] : memref<1x4xf32, #tpu.memory_space<vmem>>, vector<1x4xf32>
    %65 = vector.broadcast %64 : vector<1x4xf32> to vector<64x4xf32>
    %66 = arith.addf %63, %65 : vector<64x4xf32>
    %cst_74 = arith.constant 0.000000e+00 : f32
    %67 = vector.broadcast %cst_74 : f32 to vector<64x4xf32>
    %68 = arith.cmpf oge, %66, %67 : vector<64x4xf32>
    %cst_75 = arith.constant 1.000000e-01 : f32
    %69 = vector.broadcast %cst_75 : f32 to vector<64x4xf32>
    %70 = arith.mulf %69, %66 : vector<64x4xf32>
    %71 = arith.select %68, %66, %70 : vector<64x4xi1>, vector<64x4xf32>
    %72 = arith.truncf %71 : vector<64x4xf32> to vector<64x4xbf16>
    %c0_76 = arith.constant 0 : index
    %c0_77 = arith.constant 0 : index
    %c0_78 = arith.constant 0 : index
    %c0_79 = arith.constant 0 : index
    %73 = vector.load %arg5[%c0_76, %c0_77, %c0_78, %c0_79] : memref<1x1x64x4xbf16, #tpu.memory_space<vmem>>, vector<1x1x64x4xbf16>
    %74 = vector.shape_cast %73 : vector<1x1x64x4xbf16> to vector<64x4xbf16>
    %75 = vector.shape_cast %72 : vector<64x4xbf16> to vector<1x1x64x4xbf16>
    tpu.vector_store %arg5[%c0_76, %c0_77, %c0_78, %c0_79], %75 {strides = array<i32>} : memref<1x1x64x4xbf16, #tpu.memory_space<vmem>>, vector<1x1x64x4xbf16>,
    return
  }
  func.func @transform_0(%arg0: i32, %arg1: i32) -> (i32, i32, i32, i32, i32) {
    %c0_i32 = arith.constant 0 : i32
    %c0_i32_0 = arith.constant 0 : i32
    %c0_i32_1 = arith.constant 0 : i32
    %c0_i32_2 = arith.constant 0 : i32
    return %arg0, %arg1, %c0_i32, %c0_i32_0, %c0_i32_1 : i32, i32, i32, i32, i32
  }
  func.func @transform_1(%arg0: i32, %arg1: i32) -> (i32, i32, i32) {
    %c0_i32 = arith.constant 0 : i32
    %c0_i32_0 = arith.constant 0 : i32
    %c0_i32_1 = arith.constant 0 : i32
    %c0_i32_2 = arith.constant 0 : i32
    return %c0_i32, %c0_i32_0, %c0_i32_1 : i32, i32, i32
  }
  func.func @transform_2(%arg0: i32, %arg1: i32) -> (i32, i32) {
    %c0_i32 = arith.constant 0 : i32
    %c0_i32_0 = arith.constant 0 : i32
    %c0_i32_1 = arith.constant 0 : i32
    return %c0_i32, %c0_i32_0 : i32, i32
  }
  func.func @transform_3(%arg0: i32, %arg1: i32) -> (i32, i32, i32, i32) {
    %c0_i32 = arith.constant 0 : i32
    %c0_i32_0 = arith.constant 0 : i32
    %c0_i32_1 = arith.constant 0 : i32
    return %arg0, %arg1, %c0_i32, %c0_i32_0 : i32, i32, i32, i32
  }
}

module attributes {stable_mosaic.version = 11 : i64} {
  func.func @_downscale_conv_kernel(%arg0: i32, %arg1: i32, %arg2: memref<1x1x6x10x16xbf16, #tpu.memory_space<vmem>>, %arg3: memref<9x16x8xbf16, #tpu.memory_space<vmem>>, %arg4: memref<1x8xf32, #tpu.memory_space<vmem>>, %arg5: memref<1x1x32x8xbf16, #tpu.memory_space<vmem>>) attributes {dimension_semantics = [#tpu.dimension_semantics<parallel>, #tpu.dimension_semantics<parallel>], iteration_bounds = array<i64: 2, 1>, scalar_prefetch = 0 : i64, scratch_operands = 0 : i64, tpu.core_type = #tpu.core_type<tc>, window_params = [{transform_indices = @transform_0, window_bounds = array<i64: 1, 1, 6, 10, 16>}, {pipeline_mode = #tpu.pipeline_mode<synchronous>, transform_indices = @transform_1, window_bounds = array<i64: 9, 16, 8>}, {pipeline_mode = #tpu.pipeline_mode<synchronous>, transform_indices = @transform_2, window_bounds = array<i64: 1, 8>}, {transform_indices = @transform_3, window_bounds = array<i64: 1, 1, 32, 8>}]} {
    %cst = arith.constant 0.000000e+00 : f32
    %0 = vector.broadcast %cst : f32 to vector<32x8xf32>
    %c0 = arith.constant 0 : index
    %c0_0 = arith.constant 0 : index
    %c0_1 = arith.constant 0 : index
    %c0_2 = arith.constant 0 : index
    %c0_3 = arith.constant 0 : index
    %1 = vector.load %arg2[%c0, %c0_0, %c0_1, %c0_2, %c0_3] : memref<1x1x6x10x16xbf16, #tpu.memory_space<vmem>>, vector<1x1x4x8x16xbf16>
    %2 = vector.shape_cast %1 : vector<1x1x4x8x16xbf16> to vector<4x8x16xbf16>
    %3 = vector.shape_cast %2 : vector<4x8x16xbf16> to vector<32x16xbf16>
    %c0_4 = arith.constant 0 : index
    %c0_5 = arith.constant 0 : index
    %c0_6 = arith.constant 0 : index
    %4 = vector.load %arg3[%c0_4, %c0_5, %c0_6] : memref<9x16x8xbf16, #tpu.memory_space<vmem>>, vector<1x16x8xbf16>
    %5 = vector.shape_cast %4 : vector<1x16x8xbf16> to vector<16x8xbf16>
    %cst_7 = arith.constant dense<0.000000e+00> : vector<32x8xf32>
    %6 = tpu.matmul %3, %5, %cst_7 {dimension_numbers = #tpu.dot_dimension_numbers<[1], [0], [0], [1], [0, 0, 1, 1], [], []>} : vector<32x16xbf16>, vector<16x8xbf16>, vector<32x8xf32> -> vector<32x8xf32>
    %7 = arith.addf %0, %6 : vector<32x8xf32>
    %c0_8 = arith.constant 0 : index
    %c0_9 = arith.constant 0 : index
    %c0_10 = arith.constant 0 : index
    %c1 = arith.constant 1 : index
    %c0_11 = arith.constant 0 : index
    %8 = vector.load %arg2[%c0_8, %c0_9, %c0_10, %c1, %c0_11] : memref<1x1x6x10x16xbf16, #tpu.memory_space<vmem>>, vector<1x1x4x8x16xbf16>
    %9 = vector.shape_cast %8 : vector<1x1x4x8x16xbf16> to vector<4x8x16xbf16>
    %10 = vector.shape_cast %9 : vector<4x8x16xbf16> to vector<32x16xbf16>
    %c1_12 = arith.constant 1 : index
    %c0_13 = arith.constant 0 : index
    %c0_14 = arith.constant 0 : index
    %11 = vector.load %arg3[%c1_12, %c0_13, %c0_14] : memref<9x16x8xbf16, #tpu.memory_space<vmem>>, vector<1x16x8xbf16>
    %12 = vector.shape_cast %11 : vector<1x16x8xbf16> to vector<16x8xbf16>
    %cst_15 = arith.constant dense<0.000000e+00> : vector<32x8xf32>
    %13 = tpu.matmul %10, %12, %cst_15 {dimension_numbers = #tpu.dot_dimension_numbers<[1], [0], [0], [1], [0, 0, 1, 1], [], []>} : vector<32x16xbf16>, vector<16x8xbf16>, vector<32x8xf32> -> vector<32x8xf32>
    %14 = arith.addf %7, %13 : vector<32x8xf32>
    %c0_16 = arith.constant 0 : index
    %c0_17 = arith.constant 0 : index
    %c0_18 = arith.constant 0 : index
    %c2 = arith.constant 2 : index
    %c0_19 = arith.constant 0 : index
    %15 = vector.load %arg2[%c0_16, %c0_17, %c0_18, %c2, %c0_19] : memref<1x1x6x10x16xbf16, #tpu.memory_space<vmem>>, vector<1x1x4x8x16xbf16>
    %16 = vector.shape_cast %15 : vector<1x1x4x8x16xbf16> to vector<4x8x16xbf16>
    %17 = vector.shape_cast %16 : vector<4x8x16xbf16> to vector<32x16xbf16>
    %c2_20 = arith.constant 2 : index
    %c0_21 = arith.constant 0 : index
    %c0_22 = arith.constant 0 : index
    %18 = vector.load %arg3[%c2_20, %c0_21, %c0_22] : memref<9x16x8xbf16, #tpu.memory_space<vmem>>, vector<1x16x8xbf16>
    %19 = vector.shape_cast %18 : vector<1x16x8xbf16> to vector<16x8xbf16>
    %cst_23 = arith.constant dense<0.000000e+00> : vector<32x8xf32>
    %20 = tpu.matmul %17, %19, %cst_23 {dimension_numbers = #tpu.dot_dimension_numbers<[1], [0], [0], [1], [0, 0, 1, 1], [], []>} : vector<32x16xbf16>, vector<16x8xbf16>, vector<32x8xf32> -> vector<32x8xf32>
    %21 = arith.addf %14, %20 : vector<32x8xf32>
    %c0_24 = arith.constant 0 : index
    %c0_25 = arith.constant 0 : index
    %c1_26 = arith.constant 1 : index
    %c0_27 = arith.constant 0 : index
    %c0_28 = arith.constant 0 : index
    %22 = vector.load %arg2[%c0_24, %c0_25, %c1_26, %c0_27, %c0_28] : memref<1x1x6x10x16xbf16, #tpu.memory_space<vmem>>, vector<1x1x4x8x16xbf16>
    %23 = vector.shape_cast %22 : vector<1x1x4x8x16xbf16> to vector<4x8x16xbf16>
    %24 = vector.shape_cast %23 : vector<4x8x16xbf16> to vector<32x16xbf16>
    %c3 = arith.constant 3 : index
    %c0_29 = arith.constant 0 : index
    %c0_30 = arith.constant 0 : index
    %25 = vector.load %arg3[%c3, %c0_29, %c0_30] : memref<9x16x8xbf16, #tpu.memory_space<vmem>>, vector<1x16x8xbf16>
    %26 = vector.shape_cast %25 : vector<1x16x8xbf16> to vector<16x8xbf16>
    %cst_31 = arith.constant dense<0.000000e+00> : vector<32x8xf32>
    %27 = tpu.matmul %24, %26, %cst_31 {dimension_numbers = #tpu.dot_dimension_numbers<[1], [0], [0], [1], [0, 0, 1, 1], [], []>} : vector<32x16xbf16>, vector<16x8xbf16>, vector<32x8xf32> -> vector<32x8xf32>
    %28 = arith.addf %21, %27 : vector<32x8xf32>
    %c0_32 = arith.constant 0 : index
    %c0_33 = arith.constant 0 : index
    %c1_34 = arith.constant 1 : index
    %c1_35 = arith.constant 1 : index
    %c0_36 = arith.constant 0 : index
    %29 = vector.load %arg2[%c0_32, %c0_33, %c1_34, %c1_35, %c0_36] : memref<1x1x6x10x16xbf16, #tpu.memory_space<vmem>>, vector<1x1x4x8x16xbf16>
    %30 = vector.shape_cast %29 : vector<1x1x4x8x16xbf16> to vector<4x8x16xbf16>
    %31 = vector.shape_cast %30 : vector<4x8x16xbf16> to vector<32x16xbf16>
    %c4 = arith.constant 4 : index
    %c0_37 = arith.constant 0 : index
    %c0_38 = arith.constant 0 : index
    %32 = vector.load %arg3[%c4, %c0_37, %c0_38] : memref<9x16x8xbf16, #tpu.memory_space<vmem>>, vector<1x16x8xbf16>
    %33 = vector.shape_cast %32 : vector<1x16x8xbf16> to vector<16x8xbf16>
    %cst_39 = arith.constant dense<0.000000e+00> : vector<32x8xf32>
    %34 = tpu.matmul %31, %33, %cst_39 {dimension_numbers = #tpu.dot_dimension_numbers<[1], [0], [0], [1], [0, 0, 1, 1], [], []>} : vector<32x16xbf16>, vector<16x8xbf16>, vector<32x8xf32> -> vector<32x8xf32>
    %35 = arith.addf %28, %34 : vector<32x8xf32>
    %c0_40 = arith.constant 0 : index
    %c0_41 = arith.constant 0 : index
    %c1_42 = arith.constant 1 : index
    %c2_43 = arith.constant 2 : index
    %c0_44 = arith.constant 0 : index
    %36 = vector.load %arg2[%c0_40, %c0_41, %c1_42, %c2_43, %c0_44] : memref<1x1x6x10x16xbf16, #tpu.memory_space<vmem>>, vector<1x1x4x8x16xbf16>
    %37 = vector.shape_cast %36 : vector<1x1x4x8x16xbf16> to vector<4x8x16xbf16>
    %38 = vector.shape_cast %37 : vector<4x8x16xbf16> to vector<32x16xbf16>
    %c5 = arith.constant 5 : index
    %c0_45 = arith.constant 0 : index
    %c0_46 = arith.constant 0 : index
    %39 = vector.load %arg3[%c5, %c0_45, %c0_46] : memref<9x16x8xbf16, #tpu.memory_space<vmem>>, vector<1x16x8xbf16>
    %40 = vector.shape_cast %39 : vector<1x16x8xbf16> to vector<16x8xbf16>
    %cst_47 = arith.constant dense<0.000000e+00> : vector<32x8xf32>
    %41 = tpu.matmul %38, %40, %cst_47 {dimension_numbers = #tpu.dot_dimension_numbers<[1], [0], [0], [1], [0, 0, 1, 1], [], []>} : vector<32x16xbf16>, vector<16x8xbf16>, vector<32x8xf32> -> vector<32x8xf32>
    %42 = arith.addf %35, %41 : vector<32x8xf32>
    %c0_48 = arith.constant 0 : index
    %c0_49 = arith.constant 0 : index
    %c2_50 = arith.constant 2 : index
    %c0_51 = arith.constant 0 : index
    %c0_52 = arith.constant 0 : index
    %43 = vector.load %arg2[%c0_48, %c0_49, %c2_50, %c0_51, %c0_52] : memref<1x1x6x10x16xbf16, #tpu.memory_space<vmem>>, vector<1x1x4x8x16xbf16>
    %44 = vector.shape_cast %43 : vector<1x1x4x8x16xbf16> to vector<4x8x16xbf16>
    %45 = vector.shape_cast %44 : vector<4x8x16xbf16> to vector<32x16xbf16>
    %c6 = arith.constant 6 : index
    %c0_53 = arith.constant 0 : index
    %c0_54 = arith.constant 0 : index
    %46 = vector.load %arg3[%c6, %c0_53, %c0_54] : memref<9x16x8xbf16, #tpu.memory_space<vmem>>, vector<1x16x8xbf16>
    %47 = vector.shape_cast %46 : vector<1x16x8xbf16> to vector<16x8xbf16>
    %cst_55 = arith.constant dense<0.000000e+00> : vector<32x8xf32>
    %48 = tpu.matmul %45, %47, %cst_55 {dimension_numbers = #tpu.dot_dimension_numbers<[1], [0], [0], [1], [0, 0, 1, 1], [], []>} : vector<32x16xbf16>, vector<16x8xbf16>, vector<32x8xf32> -> vector<32x8xf32>
    %49 = arith.addf %42, %48 : vector<32x8xf32>
    %c0_56 = arith.constant 0 : index
    %c0_57 = arith.constant 0 : index
    %c2_58 = arith.constant 2 : index
    %c1_59 = arith.constant 1 : index
    %c0_60 = arith.constant 0 : index
    %50 = vector.load %arg2[%c0_56, %c0_57, %c2_58, %c1_59, %c0_60] : memref<1x1x6x10x16xbf16, #tpu.memory_space<vmem>>, vector<1x1x4x8x16xbf16>
    %51 = vector.shape_cast %50 : vector<1x1x4x8x16xbf16> to vector<4x8x16xbf16>
    %52 = vector.shape_cast %51 : vector<4x8x16xbf16> to vector<32x16xbf16>
    %c7 = arith.constant 7 : index
    %c0_61 = arith.constant 0 : index
    %c0_62 = arith.constant 0 : index
    %53 = vector.load %arg3[%c7, %c0_61, %c0_62] : memref<9x16x8xbf16, #tpu.memory_space<vmem>>, vector<1x16x8xbf16>
    %54 = vector.shape_cast %53 : vector<1x16x8xbf16> to vector<16x8xbf16>
    %cst_63 = arith.constant dense<0.000000e+00> : vector<32x8xf32>
    %55 = tpu.matmul %52, %54, %cst_63 {dimension_numbers = #tpu.dot_dimension_numbers<[1], [0], [0], [1], [0, 0, 1, 1], [], []>} : vector<32x16xbf16>, vector<16x8xbf16>, vector<32x8xf32> -> vector<32x8xf32>
    %56 = arith.addf %49, %55 : vector<32x8xf32>
    %c0_64 = arith.constant 0 : index
    %c0_65 = arith.constant 0 : index
    %c2_66 = arith.constant 2 : index
    %c2_67 = arith.constant 2 : index
    %c0_68 = arith.constant 0 : index
    %57 = vector.load %arg2[%c0_64, %c0_65, %c2_66, %c2_67, %c0_68] : memref<1x1x6x10x16xbf16, #tpu.memory_space<vmem>>, vector<1x1x4x8x16xbf16>
    %58 = vector.shape_cast %57 : vector<1x1x4x8x16xbf16> to vector<4x8x16xbf16>
    %59 = vector.shape_cast %58 : vector<4x8x16xbf16> to vector<32x16xbf16>
    %c8 = arith.constant 8 : index
    %c0_69 = arith.constant 0 : index
    %c0_70 = arith.constant 0 : index
    %60 = vector.load %arg3[%c8, %c0_69, %c0_70] : memref<9x16x8xbf16, #tpu.memory_space<vmem>>, vector<1x16x8xbf16>
    %61 = vector.shape_cast %60 : vector<1x16x8xbf16> to vector<16x8xbf16>
    %cst_71 = arith.constant dense<0.000000e+00> : vector<32x8xf32>
    %62 = tpu.matmul %59, %61, %cst_71 {dimension_numbers = #tpu.dot_dimension_numbers<[1], [0], [0], [1], [0, 0, 1, 1], [], []>} : vector<32x16xbf16>, vector<16x8xbf16>, vector<32x8xf32> -> vector<32x8xf32>
    %63 = arith.addf %56, %62 : vector<32x8xf32>
    %c0_72 = arith.constant 0 : index
    %c0_73 = arith.constant 0 : index
    %64 = vector.load %arg4[%c0_72, %c0_73] : memref<1x8xf32, #tpu.memory_space<vmem>>, vector<1x8xf32>
    %65 = vector.broadcast %64 : vector<1x8xf32> to vector<32x8xf32>
    %66 = arith.addf %63, %65 : vector<32x8xf32>
    %cst_74 = arith.constant 0.000000e+00 : f32
    %67 = vector.broadcast %cst_74 : f32 to vector<32x8xf32>
    %68 = arith.cmpf oge, %66, %67 : vector<32x8xf32>
    %cst_75 = arith.constant 1.000000e-01 : f32
    %69 = vector.broadcast %cst_75 : f32 to vector<32x8xf32>
    %70 = arith.mulf %69, %66 : vector<32x8xf32>
    %71 = arith.select %68, %66, %70 : vector<32x8xi1>, vector<32x8xf32>
    %72 = arith.truncf %71 : vector<32x8xf32> to vector<32x8xbf16>
    %c0_76 = arith.constant 0 : index
    %c0_77 = arith.constant 0 : index
    %c0_78 = arith.constant 0 : index
    %c0_79 = arith.constant 0 : index
    %73 = vector.load %arg5[%c0_76, %c0_77, %c0_78, %c0_79] : memref<1x1x32x8xbf16, #tpu.memory_space<vmem>>, vector<1x1x32x8xbf16>
    %74 = vector.shape_cast %73 : vector<1x1x32x8xbf16> to vector<32x8xbf16>
    %75 = vector.shape_cast %72 : vector<32x8xbf16> to vector<1x1x32x8xbf16>
    tpu.vector_store %arg5[%c0_76, %c0_77, %c0_78, %c0_79], %75 {strides = array<i32>} : memref<1x1x32x8xbf16, #tpu.memory_space<vmem>>, vector<1x1x32x8xbf16>,
    return
  }
  func.func @transform_0(%arg0: i32, %arg1: i32) -> (i32, i32, i32, i32, i32) {
    %c0_i32 = arith.constant 0 : i32
    %c0_i32_0 = arith.constant 0 : i32
    %c0_i32_1 = arith.constant 0 : i32
    %c0_i32_2 = arith.constant 0 : i32
    return %arg0, %arg1, %c0_i32, %c0_i32_0, %c0_i32_1 : i32, i32, i32, i32, i32
  }
  func.func @transform_1(%arg0: i32, %arg1: i32) -> (i32, i32, i32) {
    %c0_i32 = arith.constant 0 : i32
    %c0_i32_0 = arith.constant 0 : i32
    %c0_i32_1 = arith.constant 0 : i32
    %c0_i32_2 = arith.constant 0 : i32
    return %c0_i32, %c0_i32_0, %c0_i32_1 : i32, i32, i32
  }
  func.func @transform_2(%arg0: i32, %arg1: i32) -> (i32, i32) {
    %c0_i32 = arith.constant 0 : i32
    %c0_i32_0 = arith.constant 0 : i32
    %c0_i32_1 = arith.constant 0 : i32
    return %c0_i32, %c0_i32_0 : i32, i32
  }
  func.func @transform_3(%arg0: i32, %arg1: i32) -> (i32, i32, i32, i32) {
    %c0_i32 = arith.constant 0 : i32
    %c0_i32_0 = arith.constant 0 : i32
    %c0_i32_1 = arith.constant 0 : i32
    return %arg0, %arg1, %c0_i32, %c0_i32_0 : i32, i32, i32, i32
  }
}

module attributes {stable_mosaic.version = 11 : i64} {
  func.func @_downscale_conv_kernel(%arg0: i32, %arg1: i32, %arg2: memref<1x1x4x10x32xbf16, #tpu.memory_space<vmem>>, %arg3: memref<9x32x16xbf16, #tpu.memory_space<vmem>>, %arg4: memref<1x16xf32, #tpu.memory_space<vmem>>, %arg5: memref<1x1x16x16xf32, #tpu.memory_space<vmem>>) attributes {dimension_semantics = [#tpu.dimension_semantics<parallel>, #tpu.dimension_semantics<parallel>], iteration_bounds = array<i64: 2, 1>, scalar_prefetch = 0 : i64, scratch_operands = 0 : i64, tpu.core_type = #tpu.core_type<tc>, window_params = [{transform_indices = @transform_0, window_bounds = array<i64: 1, 1, 4, 10, 32>}, {pipeline_mode = #tpu.pipeline_mode<synchronous>, transform_indices = @transform_1, window_bounds = array<i64: 9, 32, 16>}, {pipeline_mode = #tpu.pipeline_mode<synchronous>, transform_indices = @transform_2, window_bounds = array<i64: 1, 16>}, {transform_indices = @transform_3, window_bounds = array<i64: 1, 1, 16, 16>}]} {
    %cst = arith.constant 0.000000e+00 : f32
    %0 = vector.broadcast %cst : f32 to vector<16x16xf32>
    %c0 = arith.constant 0 : index
    %c0_0 = arith.constant 0 : index
    %c0_1 = arith.constant 0 : index
    %c0_2 = arith.constant 0 : index
    %c0_3 = arith.constant 0 : index
    %1 = vector.load %arg2[%c0, %c0_0, %c0_1, %c0_2, %c0_3] : memref<1x1x4x10x32xbf16, #tpu.memory_space<vmem>>, vector<1x1x2x8x32xbf16>
    %2 = vector.shape_cast %1 : vector<1x1x2x8x32xbf16> to vector<2x8x32xbf16>
    %3 = vector.shape_cast %2 : vector<2x8x32xbf16> to vector<16x32xbf16>
    %c0_4 = arith.constant 0 : index
    %c0_5 = arith.constant 0 : index
    %c0_6 = arith.constant 0 : index
    %4 = vector.load %arg3[%c0_4, %c0_5, %c0_6] : memref<9x32x16xbf16, #tpu.memory_space<vmem>>, vector<1x32x16xbf16>
    %5 = vector.shape_cast %4 : vector<1x32x16xbf16> to vector<32x16xbf16>
    %cst_7 = arith.constant dense<0.000000e+00> : vector<16x16xf32>
    %6 = tpu.matmul %3, %5, %cst_7 {dimension_numbers = #tpu.dot_dimension_numbers<[1], [0], [0], [1], [0, 0, 1, 1], [], []>} : vector<16x32xbf16>, vector<32x16xbf16>, vector<16x16xf32> -> vector<16x16xf32>
    %7 = arith.addf %0, %6 : vector<16x16xf32>
    %c0_8 = arith.constant 0 : index
    %c0_9 = arith.constant 0 : index
    %c0_10 = arith.constant 0 : index
    %c1 = arith.constant 1 : index
    %c0_11 = arith.constant 0 : index
    %8 = vector.load %arg2[%c0_8, %c0_9, %c0_10, %c1, %c0_11] : memref<1x1x4x10x32xbf16, #tpu.memory_space<vmem>>, vector<1x1x2x8x32xbf16>
    %9 = vector.shape_cast %8 : vector<1x1x2x8x32xbf16> to vector<2x8x32xbf16>
    %10 = vector.shape_cast %9 : vector<2x8x32xbf16> to vector<16x32xbf16>
    %c1_12 = arith.constant 1 : index
    %c0_13 = arith.constant 0 : index
    %c0_14 = arith.constant 0 : index
    %11 = vector.load %arg3[%c1_12, %c0_13, %c0_14] : memref<9x32x16xbf16, #tpu.memory_space<vmem>>, vector<1x32x16xbf16>
    %12 = vector.shape_cast %11 : vector<1x32x16xbf16> to vector<32x16xbf16>
    %cst_15 = arith.constant dense<0.000000e+00> : vector<16x16xf32>
    %13 = tpu.matmul %10, %12, %cst_15 {dimension_numbers = #tpu.dot_dimension_numbers<[1], [0], [0], [1], [0, 0, 1, 1], [], []>} : vector<16x32xbf16>, vector<32x16xbf16>, vector<16x16xf32> -> vector<16x16xf32>
    %14 = arith.addf %7, %13 : vector<16x16xf32>
    %c0_16 = arith.constant 0 : index
    %c0_17 = arith.constant 0 : index
    %c0_18 = arith.constant 0 : index
    %c2 = arith.constant 2 : index
    %c0_19 = arith.constant 0 : index
    %15 = vector.load %arg2[%c0_16, %c0_17, %c0_18, %c2, %c0_19] : memref<1x1x4x10x32xbf16, #tpu.memory_space<vmem>>, vector<1x1x2x8x32xbf16>
    %16 = vector.shape_cast %15 : vector<1x1x2x8x32xbf16> to vector<2x8x32xbf16>
    %17 = vector.shape_cast %16 : vector<2x8x32xbf16> to vector<16x32xbf16>
    %c2_20 = arith.constant 2 : index
    %c0_21 = arith.constant 0 : index
    %c0_22 = arith.constant 0 : index
    %18 = vector.load %arg3[%c2_20, %c0_21, %c0_22] : memref<9x32x16xbf16, #tpu.memory_space<vmem>>, vector<1x32x16xbf16>
    %19 = vector.shape_cast %18 : vector<1x32x16xbf16> to vector<32x16xbf16>
    %cst_23 = arith.constant dense<0.000000e+00> : vector<16x16xf32>
    %20 = tpu.matmul %17, %19, %cst_23 {dimension_numbers = #tpu.dot_dimension_numbers<[1], [0], [0], [1], [0, 0, 1, 1], [], []>} : vector<16x32xbf16>, vector<32x16xbf16>, vector<16x16xf32> -> vector<16x16xf32>
    %21 = arith.addf %14, %20 : vector<16x16xf32>
    %c0_24 = arith.constant 0 : index
    %c0_25 = arith.constant 0 : index
    %c1_26 = arith.constant 1 : index
    %c0_27 = arith.constant 0 : index
    %c0_28 = arith.constant 0 : index
    %22 = vector.load %arg2[%c0_24, %c0_25, %c1_26, %c0_27, %c0_28] : memref<1x1x4x10x32xbf16, #tpu.memory_space<vmem>>, vector<1x1x2x8x32xbf16>
    %23 = vector.shape_cast %22 : vector<1x1x2x8x32xbf16> to vector<2x8x32xbf16>
    %24 = vector.shape_cast %23 : vector<2x8x32xbf16> to vector<16x32xbf16>
    %c3 = arith.constant 3 : index
    %c0_29 = arith.constant 0 : index
    %c0_30 = arith.constant 0 : index
    %25 = vector.load %arg3[%c3, %c0_29, %c0_30] : memref<9x32x16xbf16, #tpu.memory_space<vmem>>, vector<1x32x16xbf16>
    %26 = vector.shape_cast %25 : vector<1x32x16xbf16> to vector<32x16xbf16>
    %cst_31 = arith.constant dense<0.000000e+00> : vector<16x16xf32>
    %27 = tpu.matmul %24, %26, %cst_31 {dimension_numbers = #tpu.dot_dimension_numbers<[1], [0], [0], [1], [0, 0, 1, 1], [], []>} : vector<16x32xbf16>, vector<32x16xbf16>, vector<16x16xf32> -> vector<16x16xf32>
    %28 = arith.addf %21, %27 : vector<16x16xf32>
    %c0_32 = arith.constant 0 : index
    %c0_33 = arith.constant 0 : index
    %c1_34 = arith.constant 1 : index
    %c1_35 = arith.constant 1 : index
    %c0_36 = arith.constant 0 : index
    %29 = vector.load %arg2[%c0_32, %c0_33, %c1_34, %c1_35, %c0_36] : memref<1x1x4x10x32xbf16, #tpu.memory_space<vmem>>, vector<1x1x2x8x32xbf16>
    %30 = vector.shape_cast %29 : vector<1x1x2x8x32xbf16> to vector<2x8x32xbf16>
    %31 = vector.shape_cast %30 : vector<2x8x32xbf16> to vector<16x32xbf16>
    %c4 = arith.constant 4 : index
    %c0_37 = arith.constant 0 : index
    %c0_38 = arith.constant 0 : index
    %32 = vector.load %arg3[%c4, %c0_37, %c0_38] : memref<9x32x16xbf16, #tpu.memory_space<vmem>>, vector<1x32x16xbf16>
    %33 = vector.shape_cast %32 : vector<1x32x16xbf16> to vector<32x16xbf16>
    %cst_39 = arith.constant dense<0.000000e+00> : vector<16x16xf32>
    %34 = tpu.matmul %31, %33, %cst_39 {dimension_numbers = #tpu.dot_dimension_numbers<[1], [0], [0], [1], [0, 0, 1, 1], [], []>} : vector<16x32xbf16>, vector<32x16xbf16>, vector<16x16xf32> -> vector<16x16xf32>
    %35 = arith.addf %28, %34 : vector<16x16xf32>
    %c0_40 = arith.constant 0 : index
    %c0_41 = arith.constant 0 : index
    %c1_42 = arith.constant 1 : index
    %c2_43 = arith.constant 2 : index
    %c0_44 = arith.constant 0 : index
    %36 = vector.load %arg2[%c0_40, %c0_41, %c1_42, %c2_43, %c0_44] : memref<1x1x4x10x32xbf16, #tpu.memory_space<vmem>>, vector<1x1x2x8x32xbf16>
    %37 = vector.shape_cast %36 : vector<1x1x2x8x32xbf16> to vector<2x8x32xbf16>
    %38 = vector.shape_cast %37 : vector<2x8x32xbf16> to vector<16x32xbf16>
    %c5 = arith.constant 5 : index
    %c0_45 = arith.constant 0 : index
    %c0_46 = arith.constant 0 : index
    %39 = vector.load %arg3[%c5, %c0_45, %c0_46] : memref<9x32x16xbf16, #tpu.memory_space<vmem>>, vector<1x32x16xbf16>
    %40 = vector.shape_cast %39 : vector<1x32x16xbf16> to vector<32x16xbf16>
    %cst_47 = arith.constant dense<0.000000e+00> : vector<16x16xf32>
    %41 = tpu.matmul %38, %40, %cst_47 {dimension_numbers = #tpu.dot_dimension_numbers<[1], [0], [0], [1], [0, 0, 1, 1], [], []>} : vector<16x32xbf16>, vector<32x16xbf16>, vector<16x16xf32> -> vector<16x16xf32>
    %42 = arith.addf %35, %41 : vector<16x16xf32>
    %c0_48 = arith.constant 0 : index
    %c0_49 = arith.constant 0 : index
    %c2_50 = arith.constant 2 : index
    %c0_51 = arith.constant 0 : index
    %c0_52 = arith.constant 0 : index
    %43 = vector.load %arg2[%c0_48, %c0_49, %c2_50, %c0_51, %c0_52] : memref<1x1x4x10x32xbf16, #tpu.memory_space<vmem>>, vector<1x1x2x8x32xbf16>
    %44 = vector.shape_cast %43 : vector<1x1x2x8x32xbf16> to vector<2x8x32xbf16>
    %45 = vector.shape_cast %44 : vector<2x8x32xbf16> to vector<16x32xbf16>
    %c6 = arith.constant 6 : index
    %c0_53 = arith.constant 0 : index
    %c0_54 = arith.constant 0 : index
    %46 = vector.load %arg3[%c6, %c0_53, %c0_54] : memref<9x32x16xbf16, #tpu.memory_space<vmem>>, vector<1x32x16xbf16>
    %47 = vector.shape_cast %46 : vector<1x32x16xbf16> to vector<32x16xbf16>
    %cst_55 = arith.constant dense<0.000000e+00> : vector<16x16xf32>
    %48 = tpu.matmul %45, %47, %cst_55 {dimension_numbers = #tpu.dot_dimension_numbers<[1], [0], [0], [1], [0, 0, 1, 1], [], []>} : vector<16x32xbf16>, vector<32x16xbf16>, vector<16x16xf32> -> vector<16x16xf32>
    %49 = arith.addf %42, %48 : vector<16x16xf32>
    %c0_56 = arith.constant 0 : index
    %c0_57 = arith.constant 0 : index
    %c2_58 = arith.constant 2 : index
    %c1_59 = arith.constant 1 : index
    %c0_60 = arith.constant 0 : index
    %50 = vector.load %arg2[%c0_56, %c0_57, %c2_58, %c1_59, %c0_60] : memref<1x1x4x10x32xbf16, #tpu.memory_space<vmem>>, vector<1x1x2x8x32xbf16>
    %51 = vector.shape_cast %50 : vector<1x1x2x8x32xbf16> to vector<2x8x32xbf16>
    %52 = vector.shape_cast %51 : vector<2x8x32xbf16> to vector<16x32xbf16>
    %c7 = arith.constant 7 : index
    %c0_61 = arith.constant 0 : index
    %c0_62 = arith.constant 0 : index
    %53 = vector.load %arg3[%c7, %c0_61, %c0_62] : memref<9x32x16xbf16, #tpu.memory_space<vmem>>, vector<1x32x16xbf16>
    %54 = vector.shape_cast %53 : vector<1x32x16xbf16> to vector<32x16xbf16>
    %cst_63 = arith.constant dense<0.000000e+00> : vector<16x16xf32>
    %55 = tpu.matmul %52, %54, %cst_63 {dimension_numbers = #tpu.dot_dimension_numbers<[1], [0], [0], [1], [0, 0, 1, 1], [], []>} : vector<16x32xbf16>, vector<32x16xbf16>, vector<16x16xf32> -> vector<16x16xf32>
    %56 = arith.addf %49, %55 : vector<16x16xf32>
    %c0_64 = arith.constant 0 : index
    %c0_65 = arith.constant 0 : index
    %c2_66 = arith.constant 2 : index
    %c2_67 = arith.constant 2 : index
    %c0_68 = arith.constant 0 : index
    %57 = vector.load %arg2[%c0_64, %c0_65, %c2_66, %c2_67, %c0_68] : memref<1x1x4x10x32xbf16, #tpu.memory_space<vmem>>, vector<1x1x2x8x32xbf16>
    %58 = vector.shape_cast %57 : vector<1x1x2x8x32xbf16> to vector<2x8x32xbf16>
    %59 = vector.shape_cast %58 : vector<2x8x32xbf16> to vector<16x32xbf16>
    %c8 = arith.constant 8 : index
    %c0_69 = arith.constant 0 : index
    %c0_70 = arith.constant 0 : index
    %60 = vector.load %arg3[%c8, %c0_69, %c0_70] : memref<9x32x16xbf16, #tpu.memory_space<vmem>>, vector<1x32x16xbf16>
    %61 = vector.shape_cast %60 : vector<1x32x16xbf16> to vector<32x16xbf16>
    %cst_71 = arith.constant dense<0.000000e+00> : vector<16x16xf32>
    %62 = tpu.matmul %59, %61, %cst_71 {dimension_numbers = #tpu.dot_dimension_numbers<[1], [0], [0], [1], [0, 0, 1, 1], [], []>} : vector<16x32xbf16>, vector<32x16xbf16>, vector<16x16xf32> -> vector<16x16xf32>
    %63 = arith.addf %56, %62 : vector<16x16xf32>
    %c0_72 = arith.constant 0 : index
    %c0_73 = arith.constant 0 : index
    %64 = vector.load %arg4[%c0_72, %c0_73] : memref<1x16xf32, #tpu.memory_space<vmem>>, vector<1x16xf32>
    %65 = vector.broadcast %64 : vector<1x16xf32> to vector<16x16xf32>
    %66 = arith.addf %63, %65 : vector<16x16xf32>
    %cst_74 = arith.constant 0.000000e+00 : f32
    %67 = vector.broadcast %cst_74 : f32 to vector<16x16xf32>
    %68 = arith.cmpf oge, %66, %67 : vector<16x16xf32>
    %cst_75 = arith.constant 1.000000e-01 : f32
    %69 = vector.broadcast %cst_75 : f32 to vector<16x16xf32>
    %70 = arith.mulf %69, %66 : vector<16x16xf32>
    %71 = arith.select %68, %66, %70 : vector<16x16xi1>, vector<16x16xf32>
    %c0_76 = arith.constant 0 : index
    %c0_77 = arith.constant 0 : index
    %c0_78 = arith.constant 0 : index
    %c0_79 = arith.constant 0 : index
    %72 = vector.load %arg5[%c0_76, %c0_77, %c0_78, %c0_79] : memref<1x1x16x16xf32, #tpu.memory_space<vmem>>, vector<1x1x16x16xf32>
    %73 = vector.shape_cast %72 : vector<1x1x16x16xf32> to vector<16x16xf32>
    %74 = vector.shape_cast %71 : vector<16x16xf32> to vector<1x1x16x16xf32>
    tpu.vector_store %arg5[%c0_76, %c0_77, %c0_78, %c0_79], %74 {strides = array<i32>} : memref<1x1x16x16xf32, #tpu.memory_space<vmem>>, vector<1x1x16x16xf32>,
    return
  }
  func.func @transform_0(%arg0: i32, %arg1: i32) -> (i32, i32, i32, i32, i32) {
    %c0_i32 = arith.constant 0 : i32
    %c0_i32_0 = arith.constant 0 : i32
    %c0_i32_1 = arith.constant 0 : i32
    %c0_i32_2 = arith.constant 0 : i32
    return %arg0, %arg1, %c0_i32, %c0_i32_0, %c0_i32_1 : i32, i32, i32, i32, i32
  }
  func.func @transform_1(%arg0: i32, %arg1: i32) -> (i32, i32, i32) {
    %c0_i32 = arith.constant 0 : i32
    %c0_i32_0 = arith.constant 0 : i32
    %c0_i32_1 = arith.constant 0 : i32
    %c0_i32_2 = arith.constant 0 : i32
    return %c0_i32, %c0_i32_0, %c0_i32_1 : i32, i32, i32
  }
  func.func @transform_2(%arg0: i32, %arg1: i32) -> (i32, i32) {
    %c0_i32 = arith.constant 0 : i32
    %c0_i32_0 = arith.constant 0 : i32
    %c0_i32_1 = arith.constant 0 : i32
    return %c0_i32, %c0_i32_0 : i32, i32
  }
  func.func @transform_3(%arg0: i32, %arg1: i32) -> (i32, i32, i32, i32) {
    %c0_i32 = arith.constant 0 : i32
    %c0_i32_0 = arith.constant 0 : i32
    %c0_i32_1 = arith.constant 0 : i32
    return %arg0, %arg1, %c0_i32, %c0_i32_0 : i32, i32, i32, i32
  }
}

</mosaic_0001>

<bundles_post_ra>
// kernel: _lambda_.3
= control target key start
LH: loop header
LB: loop body
LE: loop exit
PB: predicated region body
PF: predicated region fallthrough
CT: control target
= control target key end

     0   :  { %s1915_s12 = smov 0   ;;  %s1917_s13 = smov 0   ;;  %s2444_s0 = inlined_call_operand.vmem [shape: bf16[2,1,10,10,12], index: 0, kind: input, shape index: {}]   ;;  %s2445_s1 = inlined_call_operand.vmem [shape: bf16[9,12,4], index: 1, kind: input, shape index: {}]   ;;  %s2446_s2 = inlined_call_operand.vmem [shape: f32[1,4], index: 2, kind: input, shape index: {}]   ;;  %s2447_s3 = inlined_call_operand.vmem [shape: bf16[2,1,64,4], index: 3, kind: output, shape index: {}]  }
   0x1   :  { %s1919_s14 = smov 0  }
   0x2 LB: > { %s25_s15 = sadd.s32 1, %s1889_s13  ;;  %p1590_p0 = scmp.ge.s32.totalorder %s1893_s14, 1  ;;  %s1893_s14 = sphi %s1919_s14, %s13_s14   ;;  %s1889_s13 = sphi %s1917_s13, %s2453_s13   ;;  %s1885_s12 = sphi %s1915_s12, %s2452_s12  }
   0x3   : > { %p27_p1 = scmp.ge.s32.totalorder %s25_s15, 2  ;;  %p157_p2 = scmp.lt.s32.totalorder %s1893_s14, 3 }
   0x5   : > { %s2455_s15 = smov (%p27_p1, %s25_s15), 0  ;;  %p158_p3 = pnand %p1590_p0, %p157_p2 }
   0x6   : > { %p189_p4 = scmp.lt.s32.totalorder (!%p158_p3), %s1885_s12, 1 }
   0x7   : > { %161 = sbr.rel (%p158_p3) target bundleno = 322 (0x142), region = 32 }
   0xc   : > { %v1598_v0 = vld [vmem:[%s2445_s1 + $0x8] sm:$0xf]  ;;  %v1826_v1 = vld [vmem:[%s2445_s1 + $0x8] sm:$0x30]  ;;  %vm374_vm0 = vcmask 1045504   ;;  %s2457_s12 = smov (!%p189_p4, %s1885_s12), 1 }
   0xd   : > { %v1599_v2 = vor.u32 %v1826_v1, %v1598_v0  ;;  %v1640_v3 = vld [vmem:[%s2445_s1 + $0x10] sm:$0xf]  ;;  %v1827_v4 = vld [vmem:[%s2445_s1 + $0x10] sm:$0x30]  ;;  %vm226_vm1 = vsmask.f32 3328 }
   0xe   : > { %v1641_v6 = vor.u32 %v1827_v4, %v1640_v3  ;;  %s1845_s24 = smul.u32 80, %s2457_s12  ;;  %v1952_v7 = vld [vmem:[%s2445_s1 + $0x18] sm:$0xf]  ;;  %v1957_v8 = vld [vmem:[%s2445_s1 + $0x18] sm:$0x30]  ;;  %vm361_vm3 = vcmask 97280  }
   0xf   : > { %v376_v5 = vsel %vm374_vm0, %v1599_v2, 0  ;;  %vm227_vm2 = vsmask.f32 7440  ;;  %v1963_v10 = vld [vmem:[%s2445_s1] sm:$0xf]  ;;  %v1675_v17 = vor.u32 %v1957_v8, %v1952_v7  ;;  %vm500_vm5 = vcmask 1042432  }
  0x10   : > { %1842 = vmatpush.bf16.msra.mxu1 %v376_v5  ;;  %1843 = vmatpush.bf16.msra.mxu2 %v376_v5  ;;  %v568_v9 = vsel %vm374_vm0, %v1641_v6, 0  ;;  %s1968_s6 = scalar_lea.vmem %s2444_s0, %s1845_s24  ;;  %v1973_v11 = vld [vmem:[%s2445_s1] sm:$0x30]  ;;  %v1978_v12 = vld [vmem:[%s2445_s1 + $0x20] sm:$0xf]  ;;  %vm2013_vm4 = vmor %vm226_vm1, %vm227_vm2  ;;  %vm501_vm6 = vcmask 1046532  }
  0x11   : > { %1844 = vmatpush.bf16.msra.mxu3 %v376_v5  ;;  %385 = vmatpush.bf16.msra.mxu0 %v376_v5  ;;  %v1983_v13 = vld [vmem:[%s2445_s1 + $0x20] sm:$0x30]  ;;  %v210_v14 = vld [vmem:[%s1968_s6 + $0x10] sm:$0xf]  ;;  %v211_v15 = vld [vmem:[%s1968_s6 + $0x18] sm:$0xf]  ;;  %v1623_v27 = vor.u32 %v1973_v11, %v1963_v10 }
  0x12   : > { %v1988_v16 = vld [vmem:[%s1968_s6 + $0x14] sm:$0x1]  ;;  %v1993_v18 = vld [vmem:[%s1968_s6 + $0x1c] sm:$0x1]  ;;  %v258_v19 = vshrl.u32 %v210_v14, 16  ;;  %v261_v20 = vshll.u32 %v210_v14, 16  ;;  %v1701_v28 = vor.u32 %v1983_v13, %v1978_v12  ;;  %vm2071_vm7 = vmor %vm500_vm5, %vm501_vm6 }
  0x13   : > { %v267_v21 = vshll.u32 %v1988_v16, 16  ;;  %v272_v22 = vshrl.u32 %v211_v15, 16  ;;  %v275_v23 = vshll.u32 %v211_v15, 16  ;;  %v281_v24 = vshll.u32 %v1993_v18, 16  ;;  %v212_v25 = vld [vmem:[%s1968_s6 + $0x20] sm:$0xf] }
  0x14   : > { %577 = vmatpush.bf16.msrb.mxu2 %v568_v9  ;;  %v213_v26 = vld [vmem:[%s1968_s6 + $0x28] sm:$0xf]  ;;  %v260_v29 = vrot.slane %v258_v19, 4  ;;  %v263_v30 = vrot.slane %v261_v20, 5  ;;  %v2004_v33 = vld [vmem:[%s1968_s6 + $0x24] sm:$0x1] }
  0x15   : > { %v269_v31 = vrot.slane %v267_v21, 5  ;;  %v274_v32 = vrot.slane %v272_v22, 4  ;;  %v277_v34 = vrot.slane %v275_v23, 5  ;;  %v283_v35 = vrot.slane %v281_v24, 5  ;;  %v2007_v36 = vld [vmem:[%s1968_s6 + $0x2c] sm:$0x1] }
  0x16   : > { %v286_v37 = vshrl.u32 %v212_v25, 16  ;;  %v289_v38 = vshll.u32 %v212_v25, 16  ;;  %v264_v39 = vor.u32 %v263_v30, %v260_v29  ;;  %v295_v40 = vshll.u32 %v2004_v33, 16  ;;  %v214_v43 = vld [vmem:[%s1968_s6 + $0x30] sm:$0xf]  ;;  %s1820_s8 = sshll.u32 %s2457_s12, 5 }
  0x17   : > { %v300_v41 = vshrl.u32 %v213_v26, 16  ;;  %v303_v42 = vshll.u32 %v213_v26, 16  ;;  %v278_v45 = vor.u32 %v277_v34, %v274_v32  ;;  %v309_v48 = vshll.u32 %v2007_v36, 16  ;;  %v2019_v53 = vld [vmem:[%s1968_s6 + $0x34] sm:$0x1]  ;;  %s2389_s11 = scalar_lea.vmem %s2447_s3, %s1820_s8 }
  0x18   : > { %v288_v46 = vrot.slane %v286_v37, 4  ;;  %v291_v47 = vrot.slane %v289_v38, 5  ;;  %v265_v49 = vrot.slane %v264_v39, 4  ;;  %v297_v50 = vrot.slane %v295_v40, 5  ;;  %v215_v60 = vld [vmem:[%s1968_s6 + $0x38] sm:$0xf] }
  0x19   : > { %v302_v51 = vrot.slane %v300_v41, 4  ;;  %v305_v52 = vrot.slane %v303_v42, 5  ;;  %v279_v54 = vrot.slane %v278_v45, 4  ;;  %v311_v56 = vrot.slane %v309_v48, 5  ;;  %v2025_v61 = vld [vmem:[%s1968_s6 + $0x3c] sm:$0x1] }
  0x1a   : > { %v292_v55 = vor.u32 %v291_v47, %v288_v46  ;;  %v314_v57 = vshrl.u32 %v214_v43, 16  ;;  %v270_v58 = vsel %vm2013_vm4, %v265_v49, %v269_v31  ;;  %v317_v62 = vshll.u32 %v214_v43, 16  ;;  %v208_v14 = vld [vmem:[%s1968_s6] sm:$0xf]  ;;  %v2035_v22 = vld [vmem:[%s1968_s6 + $0x4] sm:$0x1] }
  0x1b   : > { %v306_v59 = vor.u32 %v305_v52, %v302_v51  ;;  %v323_v63 = vshll.u32 %v2019_v53, 16  ;;  %v284_v0 = vsel %vm2013_vm4, %v279_v54, %v283_v35  ;;  %v346_v1 = vunpack.c.l.b16 %v270_v58  ;;  %v209_v29 = vld [vmem:[%s1968_s6 + $0x8] sm:$0xf]  ;;  %v219_v42 = vld [vmem:[%s1968_s6 + $0xc] sm:$0x1] }
  0x1c   : > { %v293_v2 = vrot.slane %v292_v55, 4  ;;  %v316_v3 = vrot.slane %v314_v57, 4  ;;  %v347_v4 = vunpack.c.l.b16 %v284_v0  ;;  %v319_v6 = vrot.slane %v317_v62, 5  ;;  %v476_v55 = vld [vmem:[%s1968_s6] sm:$0xe] }
  0x1d   : > { %v307_v5 = vrot.slane %v306_v59, 4  ;;  %v325_v9 = vrot.slane %v323_v63, 5  ;;  %v328_v19 = vshrl.u32 %v215_v60, 16  ;;  %v331_v20 = vshll.u32 %v215_v60, 16  ;;  %v477_v60 = vld [vmem:[%s1968_s6 + $0x8] sm:$0xe] }
  0x1e   : > { %v298_v15 = vsel %vm2013_vm4, %v293_v2, %v297_v50  ;;  %v337_v21 = vshll.u32 %v2025_v61, 16  ;;  %v353_v23 = vpack.c.b16 %v347_v4, %v346_v1  ;;  %v320_v26 = vor.u32 %v319_v6, %v316_v3  ;;  %v1760_v2 = vld [vmem:[%s2445_s1 + $0x30] sm:$0xf]  ;;  %v1839_v3 = vld [vmem:[%s2445_s1 + $0x30] sm:$0x30] }
  0x1f   : > { %v312_v24 = vsel %vm2013_vm4, %v307_v5, %v311_v56  ;;  %v348_v25 = vunpack.c.l.b16 %v298_v15  ;;  %v330_v31 = vrot.slane %v328_v19, 4  ;;  %v333_v32 = vrot.slane %v331_v20, 5  ;;  %v1680_v12 = vld [vmem:[%s1968_s6 + $0x8] sm:$0xf]  ;;  %v2079_v13 = vld [vmem:[%s1968_s6 + $0xc] sm:$0x1] }
  0x20   : > { %v349_v30 = vunpack.c.l.b16 %v312_v24  ;;  %v339_v34 = vrot.slane %v337_v21, 5  ;;  %1601 = vmatmul.msk.bf16.vlgmr.msra.gmra.mxu1 %vm361_vm3, %v353_v23  ;;  %v321_v35 = vrot.slane %v320_v26, 4  ;;  %v230_v37 = vshrl.u32 %v208_v14, 16  ;;  %v1606_v20 = vld [vmem:[%s1968_s6] sm:$0xf] }
  0x21   : > { %v233_v38 = vshll.u32 %v208_v14, 16  ;;  %v239_v39 = vshll.u32 %v2035_v22, 16  ;;  %v334_v41 = vor.u32 %v333_v32, %v330_v31  ;;  %v244_v43 = vshrl.u32 %v209_v29, 16  ;;  %v1821_v21 = vld [vmem:[%s1968_s6 + $0x4] sm:$0xf0] }
  0x22   : > { %v354_v40 = vpack.c.b16 %v349_v30, %v348_v25  ;;  %v247_v45 = vshll.u32 %v209_v29, 16  ;;  %v326_v46 = vsel %vm2013_vm4, %v321_v35, %v325_v9  ;;  %v232_v47 = vrot.slane %v230_v37, 4  ;;  %v2091_v24 = vld [vmem:[%s1968_s6 + $0x14] sm:$0x1]  ;;  %v1786_v31 = vld [vmem:[%s2445_s1 + $0x38] sm:$0xf] }
  0x23   : > { %v235_v48 = vrot.slane %v233_v38, 5  ;;  %v241_v49 = vrot.slane %v239_v39, 5  ;;  %v335_v50 = vrot.slane %v334_v41, 4  ;;  %v350_v51 = vunpack.c.l.b16 %v326_v46  ;;  %v1840_v32 = vld [vmem:[%s2445_s1 + $0x38] sm:$0x30] }
  0x24   : > { %1602 = vmatmul.msk.bf16.vlgmr.msra.gmra.mxu2 %vm361_vm3, %v354_v40  ;;  %v246_v52 = vrot.slane %v244_v43, 4  ;;  %v249_v54 = vrot.slane %v247_v45, 5  ;;  %v253_v57 = vshll.u32 %v219_v42, 16  ;;  %v505_v58 = vrot.slane %v2035_v22, 5  ;;  %v1834_v40 = vld [vmem:[%s2445_s1 + $0x28] sm:$0x30] }
  0x25   : > { %v236_v56 = vor.u32 %v235_v48, %v232_v47  ;;  %v509_v59 = vrot.slane %v219_v42, 5  ;;  %v340_v62 = vsel %vm2013_vm4, %v335_v50, %v339_v34  ;;  %v657_v0 = vsel %vm374_vm0, %v1675_v17, 0  ;;  %v1726_v34 = vld [vmem:[%s2445_s1 + $0x28] sm:$0xf]  ;;  %v1812_v46 = vld [vmem:[%s2445_s1 + $0x40] sm:$0xf] }
  0x26   : > { %v250_v63 = vor.u32 %v249_v54, %v246_v52  ;;  %v445_v1 = vsel %vm374_vm0, %v1623_v27, 0  ;;  %v351_v4 = vunpack.c.l.b16 %v340_v62  ;;  %v255_v8 = vrot.slane %v253_v57, 5  ;;  %666 = vmatpush.bf16.msrb.mxu3 %v657_v0  ;;  %v1841_v47 = vld [vmem:[%s2445_s1 + $0x40] sm:$0x30]  ;;  %v1684_v0 = vld [vmem:[%s1968_s6 + $0x18] sm:$0xf] }
  0x27   : > { %v237_v7 = vrot.slane %v236_v56, 4  ;;  %454 = vmatpush.bf16.msrb.mxu1 %v445_v1  ;;  %v857_v10 = vsel %vm374_vm0, %v1701_v28, 0  ;;  %v1628_v27 = vrot.slane %v476_v55, 9  ;;  %v1629_v5 = vrot.slane %v477_v60, 9  ;;  %v1682_v28 = vld [vmem:[%s1968_s6 + $0x10] sm:$0xf] }
  0x28   : > { %v251_v17 = vrot.slane %v250_v63, 4  ;;  %866 = vmatpush.bf16.msrb.mxu0 %v857_v10  ;;  %v355_v6 = vpack.c.b16 %v351_v4, %v350_v51  ;;  %v1761_v14 = vor.u32 %v1839_v3, %v1760_v2  ;;  %v713_v35 = vshrl.u32 %v1680_v12, 16  ;;  %v479_v63 = vld [vmem:[%s1968_s6 + $0x18] sm:$0xe]  ;;  %v1658_v1 = vld [vmem:[%s1968_s6 + $0x8] sm:$0xf] }
  0x29   : > { %v242_v9 = vsel %vm2013_vm4, %v237_v7, %v241_v49  ;;  %v506_v22 = vsel %vm2071_vm7, %v1628_v27, %v505_v58  ;;  %v510_v23 = vsel %vm2071_vm7, %v1629_v5, %v509_v59  ;;  %v716_v37 = vshll.u32 %v1680_v12, 16  ;;  %v478_v59 = vld [vmem:[%s1968_s6 + $0x10] sm:$0xe] }
  0x2a   : > { %v256_v15 = vsel %vm2013_vm4, %v251_v17, %v255_v8  ;;  %v344_v19 = vunpack.c.l.b16 %v242_v9  ;;  %1603 = vmatmul.msk.bf16.vlgmr.msra.gmra.mxu3 %vm361_vm3, %v355_v6  ;;  %v538_v26 = vunpack.c.l.b16 %v506_v22  ;;  %v539_v29 = vunpack.c.l.b16 %v510_v23  ;;  %v1828_v8 = vld [vmem:[%s1968_s6 + $0xc] sm:$0xf0] }
  0x2b   : > { %v345_v25 = vunpack.c.l.b16 %v256_v15  ;;  %v1074_v30 = vsel %vm374_vm0, %v1761_v14, 0  ;;  %v722_v38 = vshll.u32 %v2079_v13, 16  ;;  %v727_v39 = vshrl.u32 %v1682_v28, 16  ;;  %v1686_v14 = vld [vmem:[%s1968_s6 + $0x20] sm:$0xf] }
  0x2c   : > { %1083 = vmatpush.bf16.msra.mxu2 %v1074_v30  ;;  %v1607_v42 = vor.u32 %v1821_v21, %v1606_v20  ;;  %v730_v43 = vshll.u32 %v1682_v28, 16  ;;  %v736_v45 = vshll.u32 %v2091_v24, 16  ;;  %v715_v48 = vrot.slane %v713_v35, 4  ;;  %v2141_v30 = vld [vmem:[%s1968_s6 + $0x24] sm:$0x1] }
  0x2d   : > { %v352_v41 = vpack.c.b16 %v345_v25, %v344_v19  ;;  %v718_v49 = vrot.slane %v716_v37, 5  ;;  %v729_v50 = vrot.slane %v727_v39, 4  ;;  %v546_v51 = vpack.c.b16 %v539_v29, %v538_v26  ;;  %v2138_v29 = vld [vmem:[%s1968_s6 + $0x1c] sm:$0x1]  ;;  %v1822_v35 = vld [vmem:[%s1968_s6 + $0x14] sm:$0xf0] }
  0x2e   : > { %v724_v52 = vrot.slane %v722_v38, 5  ;;  %v732_v54 = vrot.slane %v730_v43, 5  ;;  %v1787_v56 = vor.u32 %v1840_v32, %v1786_v31  ;;  %v1727_v57 = vor.u32 %v1834_v40, %v1726_v34  ;;  %v1610_v34 = vld [vmem:[%s1968_s6 + $0x10] sm:$0xf] }
  0x2f   : > { %1600 = vmatmul.msk.bf16.vlgmr.msra.gmra.mxu0 %vm361_vm3, %v352_v41  ;;  %v719_v55 = vor.u32 %v718_v49, %v715_v48  ;;  %v1813_v58 = vor.u32 %v1841_v47, %v1812_v46  ;;  %v738_v62 = vrot.slane %v736_v45, 5  ;;  %v1630_v17 = vrot.slane %v478_v59, 9 }
  0x30   : > { %1624 = vmatmul.msk.bf16.vlgmr.msrb.gmra.mxu1 %vm361_vm3, %v1607_v42  ;;  %v733_v60 = vor.u32 %v732_v54, %v729_v50  ;;  %v1274_v3 = vsel %vm374_vm0, %v1787_v56, 0  ;;  %v985_v4 = vsel %vm374_vm0, %v1727_v57, 0  ;;  %v513_v27 = vrot.slane %v1988_v16, 5  ;;  %v480_v54 = vld [vmem:[%s1968_s6 + $0x20] sm:$0xe] }
  0x31   : > { %v720_v2 = vrot.slane %v719_v55, 4  ;;  %v1402_v7 = vsel %vm374_vm0, %v1813_v58, 0  ;;  %1283 = vmatpush.bf16.msra.mxu3 %v1274_v3  ;;  %994 = vmatpush.bf16.msra.mxu1 %v985_v4  ;;  %v1631_v6 = vrot.slane %v479_v63, 9  ;;  %v517_v9 = vrot.slane %v1993_v18, 5  ;;  %v481_v55 = vld [vmem:[%s1968_s6 + $0x28] sm:$0xe] }
  0x32   : > { %v734_v10 = vrot.slane %v733_v60, 4  ;;  %1411 = vmatpush.bf16.msra.mxu0 %v1402_v7  ;;  %v741_v12 = vshrl.u32 %v1684_v0, 16  ;;  %v744_v15 = vshll.u32 %v1684_v0, 16  ;;  %v1659_v16 = vor.u32 %v1828_v8, %v1658_v1  ;;  %v1662_v56 = vld [vmem:[%s1968_s6 + $0x18] sm:$0xf] }
  0x33   : > { %v725_v5 = vsel %vm2013_vm4, %v720_v2, %v724_v52  ;;  %v755_v21 = vshrl.u32 %v1686_v14, 16  ;;  %v758_v22 = vshll.u32 %v1686_v14, 16  ;;  %v514_v23 = vsel %vm2071_vm7, %v1630_v17, %v513_v27  ;;  %v1690_v52 = vld [vmem:[%s1968_s6 + $0x30] sm:$0xf]  ;;  %v1829_v57 = vld [vmem:[%s1968_s6 + $0x1c] sm:$0xf0] }
  0x34   : > { %1642 = vmatmul.msk.bf16.vlgmr.msrb.gmra.mxu2 %vm361_vm3, %v546_v51  ;;  %v739_v28 = vsel %vm2013_vm4, %v734_v10, %v738_v62  ;;  %v827_v19 = vunpack.c.l.b16 %v725_v5  ;;  %v518_v25 = vsel %vm2071_vm7, %v1631_v6, %v517_v9  ;;  %v743_v18 = vrot.slane %v741_v12, 4  ;;  %v1688_v51 = vld [vmem:[%s1968_s6 + $0x28] sm:$0xf]  ;;  %v2164_v5 = vld [vmem:[%s1968_s6 + $0x2c] sm:$0x1] }
  0x35   : > { %v828_v20 = vunpack.c.l.b16 %v739_v28  ;;  %v746_v26 = vrot.slane %v744_v15, 5  ;;  %v757_v31 = vrot.slane %v755_v21, 4  ;;  %v760_v32 = vrot.slane %v758_v22, 5  ;;  %v1614_v28 = vld [vmem:[%s1968_s6 + $0x20] sm:$0xf] }
  0x36   : > { %v540_v38 = vunpack.c.l.b16 %v514_v23  ;;  %v541_v39 = vunpack.c.l.b16 %v518_v25  ;;  %v750_v41 = vshll.u32 %v2138_v29, 16  ;;  %v764_v43 = vshll.u32 %v2141_v30, 16 }
  0x37   : > { %v835_v37 = vpack.c.b16 %v828_v20, %v827_v19  ;;  %v747_v40 = vor.u32 %v746_v26, %v743_v18  ;;  %v761_v42 = vor.u32 %v760_v32, %v757_v31  ;;  %v1611_v45 = vor.u32 %v1822_v35, %v1610_v34  ;;  %v482_v31 = vld [vmem:[%s1968_s6 + $0x30] sm:$0xe] }
  0x38   : > { %v547_v46 = vpack.c.b16 %v541_v39, %v540_v38  ;;  %v752_v48 = vrot.slane %v750_v41, 5  ;;  %v766_v50 = vrot.slane %v764_v43, 5  ;;  %v769_v58 = vshrl.u32 %v1688_v51, 16  ;;  %v1692_v38 = vld [vmem:[%s1968_s6 + $0x38] sm:$0xf] }
  0x39   : > { %v748_v47 = vrot.slane %v747_v40, 4  ;;  %v762_v49 = vrot.slane %v761_v42, 4  ;;  %v772_v59 = vshll.u32 %v1688_v51, 16  ;;  %v783_v63 = vshrl.u32 %v1690_v52, 16  ;;  %v1694_v39 = vld [vmem:[%s1968_s6 + $0x40] sm:$0xf] }
  0x3a   : > { %1676 = vmatmul.msk.bf16.vlgmr.msrb.gmra.mxu3 %vm361_vm3, %v1659_v16  ;;  %v786_v0 = vshll.u32 %v1690_v52, 16  ;;  %v1632_v1 = vrot.slane %v480_v54, 9  ;;  %v521_v2 = vrot.slane %v2004_v33, 5  ;;  %v1633_v3 = vrot.slane %v481_v55, 9  ;;  %v2171_v33 = vld [vmem:[%s1968_s6 + $0x34] sm:$0x1] }
  0x3b   : > { %v753_v60 = vsel %vm2013_vm4, %v748_v47, %v752_v48  ;;  %v767_v62 = vsel %vm2013_vm4, %v762_v49, %v766_v50  ;;  %v525_v4 = vrot.slane %v2007_v36, 5  ;;  %v1663_v7 = vor.u32 %v1829_v57, %v1662_v56  ;;  %v1823_v36 = vld [vmem:[%s1968_s6 + $0x24] sm:$0xf0]  ;;  %v1830_v43 = vld [vmem:[%s1968_s6 + $0x2c] sm:$0xf0] }
  0x3c   : > { %v829_v8 = vunpack.c.l.b16 %v753_v60  ;;  %v830_v10 = vunpack.c.l.b16 %v767_v62  ;;  %v771_v17 = vrot.slane %v769_v58, 4  ;;  %v774_v27 = vrot.slane %v772_v59, 5  ;;  %v1666_v40 = vld [vmem:[%s1968_s6 + $0x28] sm:$0xf]  ;;  %v2198_v57 = vld [vmem:[%s1968_s6 + $0x3c] sm:$0x1] }
  0x3d   : > { %v785_v6 = vrot.slane %v783_v63, 4  ;;  %v788_v9 = vrot.slane %v786_v0, 5  ;;  %v522_v14 = vsel %vm2071_vm7, %v1632_v1, %v521_v2  ;;  %v526_v12 = vsel %vm2071_vm7, %v1633_v3, %v525_v4  ;;  %v2201_v58 = vld [vmem:[%s1968_s6 + $0x44] sm:$0x1]  ;;  %v1618_v0 = vld [vmem:[%s1968_s6 + $0x30] sm:$0xf] }
  0x3e   : > { %v836_v15 = vpack.c.b16 %v830_v10, %v829_v8  ;;  %v775_v16 = vor.u32 %v774_v27, %v771_v17  ;;  %v778_v19 = vshll.u32 %v2164_v5, 16  ;;  %v542_v20 = vunpack.c.l.b16 %v522_v14  ;;  %v1824_v1 = vld [vmem:[%s1968_s6 + $0x34] sm:$0xf0]  ;;  %v1766_v10 = vld [vmem:[%s1968_s6 + $0x10] sm:$0xf] }
  0x3f   : > { %1702 = vmatmul.msk.bf16.vlgmr.msrb.gmra.mxu0 %vm361_vm3, %v835_v37  ;;  %v543_v21 = vunpack.c.l.b16 %v526_v12  ;;  %v789_v22 = vor.u32 %v788_v9, %v785_v6  ;;  %v792_v23 = vshll.u32 %v2171_v33, 16  ;;  %v1615_v25 = vor.u32 %v1823_v36, %v1614_v28  ;;  %v483_v37 = vld [vmem:[%s1968_s6 + $0x38] sm:$0xe] }
  0x40   : > { %1625 = vmatmul.msk.bf16.gmra.mxu1 %vm361_vm3, %v1611_v45  ;;  %v776_v18 = vrot.slane %v775_v16, 4  ;;  %v780_v26 = vrot.slane %v778_v19, 5  ;;  %v1634_v41 = vrot.slane %v482_v31, 9  ;;  %v529_v42 = vrot.slane %v2019_v53, 5  ;;  %v1768_v9 = vld [vmem:[%s1968_s6 + $0x18] sm:$0xf] }
  0x41   : > { %v548_v32 = vpack.c.b16 %v543_v21, %v542_v20  ;;  %v790_v34 = vrot.slane %v789_v22, 4  ;;  %v794_v35 = vrot.slane %v792_v23, 5  ;;  %v533_v47 = vrot.slane %v2025_v61, 5  ;;  %v1706_v16 = vld [vmem:[%s1968_s6 + $0x8] sm:$0xe] }
  0x42   : > { %v781_v45 = vsel %vm2013_vm4, %v776_v18, %v780_v26  ;;  %v797_v48 = vshrl.u32 %v1692_v38, 16  ;;  %v800_v50 = vshll.u32 %v1692_v38, 16  ;;  %v811_v51 = vshrl.u32 %v1694_v39, 16  ;;  %v1707_v19 = vld [vmem:[%s1968_s6 + $0x10] sm:$0xe] }
  0x43   : > { %v795_v49 = vsel %vm2013_vm4, %v790_v34, %v794_v35  ;;  %v814_v53 = vshll.u32 %v1694_v39, 16  ;;  %v1667_v52 = vor.u32 %v1830_v43, %v1666_v40  ;;  %v831_v54 = vunpack.c.l.b16 %v781_v45  ;;  %v1767_v35 = vld [vmem:[%s1968_s6 + $0x14] sm:$0x1]  ;;  %v1831_v38 = vld [vmem:[%s1968_s6 + $0x3c] sm:$0xf0] }
  0x44   : > { %1643 = vmatmul.msk.bf16.gmra.mxu2 %vm361_vm3, %v547_v46  ;;  %v1635_v46 = vrot.slane %v483_v37, 9  ;;  %v832_v55 = vunpack.c.l.b16 %v795_v49  ;;  %v530_v56 = vsel %vm2071_vm7, %v1634_v41, %v529_v42  ;;  %v799_v59 = vrot.slane %v797_v48, 4  ;;  %v1670_v37 = vld [vmem:[%s1968_s6 + $0x38] sm:$0xf] }
  0x45   : > { %v802_v60 = vrot.slane %v800_v50, 5  ;;  %v813_v62 = vrot.slane %v811_v51, 4  ;;  %v816_v63 = vrot.slane %v814_v53, 5  ;;  %v544_v2 = vunpack.c.l.b16 %v530_v56 }
  0x46   : > { %v534_v61 = vsel %vm2071_vm7, %v1635_v46, %v533_v47  ;;  %v837_v3 = vpack.c.b16 %v832_v55, %v831_v54  ;;  %v820_v8 = vshll.u32 %v2201_v58, 16  ;;  %v1619_v6 = vor.u32 %v1824_v1, %v1618_v0  ;;  %v1770_v1 = vld [vmem:[%s1968_s6 + $0x20] sm:$0xf] }
  0x47   : > { %v545_v4 = vunpack.c.l.b16 %v534_v61  ;;  %v803_v17 = vor.u32 %v802_v60, %v799_v59  ;;  %v817_v27 = vor.u32 %v816_v63, %v813_v62  ;;  %v1130_v14 = vshrl.u32 %v1766_v10, 16  ;;  %v1744_v61 = vld [vmem:[%s1968_s6 + $0x10] sm:$0xf]  ;;  %v1793_v60 = vld [vmem:[%s1968_s6 + $0x18] sm:$0xe] }
  0x48   : > { %v1133_v12 = vshll.u32 %v1766_v10, 16  ;;  %v1144_v22 = vshrl.u32 %v1768_v9, 16  ;;  %v1147_v23 = vshll.u32 %v1768_v9, 16  ;;  %v926_v18 = vrot.slane %v2091_v24, 5  ;;  %v1769_v24 = vld [vmem:[%s1968_s6 + $0x1c] sm:$0x1] }
  0x49   : > { %v549_v28 = vpack.c.b16 %v545_v4, %v544_v2  ;;  %v804_v20 = vrot.slane %v803_v17, 4  ;;  %v818_v21 = vrot.slane %v817_v27, 4  ;;  %v1714_v26 = vrot.slane %v1706_v16, 9  ;;  %v1792_v59 = vld [vmem:[%s1968_s6 + $0x10] sm:$0xe] }
  0x4a   : > { %1677 = vmatmul.msk.bf16.gmra.mxu3 %vm361_vm3, %v1663_v7  ;;  %v806_v7 = vshll.u32 %v2198_v57, 16  ;;  %v1715_v31 = vrot.slane %v1707_v19, 9  ;;  %v1135_v34 = vrot.slane %v1133_v12, 5  ;;  %v1149_v41 = vrot.slane %v1147_v23, 5  ;;  %v1835_v62 = vld [vmem:[%s1968_s6 + $0x14] sm:$0xf0] }
  0x4b   : > { %v1139_v46 = vshll.u32 %v1767_v35, 16  ;;  %v1671_v47 = vor.u32 %v1831_v38, %v1670_v37  ;;  %v1153_v51 = vshll.u32 %v1769_v24, 16  ;;  %v1801_v10 = vrot.slane %v1793_v60, 9  ;;  %v1708_v27 = vld [vmem:[%s1968_s6 + $0x18] sm:$0xe] }
  0x4c   : > { %v808_v36 = vrot.slane %v806_v7, 5  ;;  %v927_v43 = vsel %vm2071_vm7, %v1715_v31, %v926_v18  ;;  %v1800_v7 = vrot.slane %v1792_v59, 9  ;;  %v1745_v17 = vor.u32 %v1835_v62, %v1744_v61  ;;  %v1773_v37 = vld [vmem:[%s1968_s6 + $0x2c] sm:$0x1]  ;;  %v1776_v61 = vld [vmem:[%s1968_s6 + $0x38] sm:$0xf] }
  0x4d   : > { %v1141_v55 = vrot.slane %v1139_v46, 5  ;;  %v1155_v0 = vrot.slane %v1153_v51, 5  ;;  %v1158_v9 = vshrl.u32 %v1770_v1, 16  ;;  %v1716_v19 = vrot.slane %v1708_v27, 9  ;;  %v1748_v46 = vld [vmem:[%s1968_s6 + $0x20] sm:$0xf] }
  0x4e   : > { %v809_v39 = vsel %vm2013_vm4, %v804_v20, %v808_v36  ;;  %v930_v20 = vrot.slane %v2138_v29, 5  ;;  %v1774_v51 = vld [vmem:[%s1968_s6 + $0x30] sm:$0xf]  ;;  %v938_v27 = vrot.slane %v2164_v5, 5  ;;  %v1777_v5 = vld [vmem:[%s1968_s6 + $0x3c] sm:$0x1] }
  0x4f   : > { %1703 = vmatmul.msk.bf16.gmra.mxu0 %vm361_vm3, %v836_v15  ;;  %v822_v15 = vrot.slane %v820_v8, 5  ;;  %v833_v48 = vunpack.c.l.b16 %v809_v39  ;;  %v1339_v8 = vrot.slane %v1767_v35, 5  ;;  %v1160_v18 = vrot.slane %v1158_v9, 4 }
  0x50   : > { %1626 = vmatmul.msk.bf16.gmra.mxu1 %vm361_vm3, %v1615_v25  ;;  %v922_v25 = vrot.slane %v2079_v13, 5  ;;  %v1146_v13 = vrot.slane %v1144_v22, 4  ;;  %v934_v22 = vrot.slane %v2141_v30, 5  ;;  %v931_v30 = vsel %vm2071_vm7, %v1716_v19, %v930_v20 }
  0x51   : > { %v823_v40 = vsel %vm2013_vm4, %v818_v21, %v822_v15  ;;  %v1186_v60 = vshrl.u32 %v1774_v51, 16  ;;  %v1189_v62 = vshll.u32 %v1774_v51, 16  ;;  %vm1485_vm9 = vcmask 27648  }
  0x52   : > { %v923_v42 = vsel %vm2071_vm7, %v1714_v26, %v922_v25  ;;  %v834_v49 = vunpack.c.l.b16 %v823_v40  ;;  %v1150_v50 = vor.u32 %v1149_v41, %v1146_v13  ;;  %v1340_v25 = vsel %vm2071_vm7, %v1800_v7, %v1339_v8 }
  0x53   : > { %v955_v53 = vunpack.c.l.b16 %v923_v42  ;;  %v1372_v29 = vunpack.c.l.b16 %v1340_v25  ;;  %v1181_v42 = vshll.u32 %v1773_v37, 16  ;;  %v1351_v8 = vrot.slane %v1773_v37, 5 }
  0x54   : > { %1644 = vmatmul.msk.bf16.gmra.mxu2 %vm361_vm3, %v548_v32  ;;  %v1132_v32 = vrot.slane %v1130_v14, 4  ;;  %v838_v56 = vpack.c.b16 %v834_v49, %v833_v48  ;;  %v1151_v63 = vrot.slane %v1150_v50, 4  ;;  %v1161_v14 = vshll.u32 %v1770_v1, 16  ;;  %v1794_v50 = vld [vmem:[%s1968_s6 + $0x20] sm:$0xe] }
  0x55   : > { %v1802_v59 = vrot.slane %v1794_v50, 9 }
  0x56   : > { %v1136_v45 = vor.u32 %v1135_v34, %v1132_v32  ;;  %v1156_v12 = vsel %vm2013_vm4, %v1151_v63, %v1155_v0  ;;  %v1163_v26 = vrot.slane %v1161_v14, 5  ;;  %v1771_v32 = vld [vmem:[%s1968_s6 + $0x24] sm:$0x1] }
  0x57   : > { %v1245_v23 = vunpack.c.l.b16 %v1156_v12  ;;  %v1167_v41 = vshll.u32 %v1771_v32, 16  ;;  %v1347_v1 = vrot.slane %v1771_v32, 5  ;;  %v1188_v12 = vrot.slane %v1186_v60, 4 }
  0x58   : > { %v1137_v54 = vrot.slane %v1136_v45, 4  ;;  %v1164_v13 = vor.u32 %v1163_v26, %v1160_v18 }
  0x59   : > { %v1169_v49 = vrot.slane %v1167_v41, 5  ;;  %v1348_v19 = vsel %vm2071_vm7, %v1802_v59, %v1347_v1  ;;  %v1797_v41 = vld [vmem:[%s1968_s6 + $0x38] sm:$0xe]  ;;  %v1359_v59 = vrot.slane %v1777_v5, 5  ;;  %v946_v1 = vrot.slane %v2198_v57, 5 }
  0x5a   : > { %1678 = vmatmul.msk.bf16.gmra.mxu3 %vm361_vm3, %v1667_v52  ;;  %v956_v52 = vunpack.c.l.b16 %v927_v43  ;;  %v1142_v4 = vsel %vm2013_vm4, %v1137_v54, %v1141_v55  ;;  %v957_v43 = vunpack.c.l.b16 %v931_v30  ;;  %v1165_v48 = vrot.slane %v1164_v13, 4  ;;  %v1795_v55 = vld [vmem:[%s1968_s6 + $0x28] sm:$0xe]  ;;  %v1796_v13 = vld [vmem:[%s1968_s6 + $0x30] sm:$0xe] }
  0x5b   : > { %v1244_v16 = vunpack.c.l.b16 %v1142_v4  ;;  %v1183_v54 = vrot.slane %v1181_v42, 5  ;;  %v1711_v4 = vld [vmem:[%s1968_s6 + $0x30] sm:$0xe]  ;;  %v1805_v51 = vrot.slane %v1797_v41, 9 }
  0x5c   : > { %v963_v2 = vpack.c.b16 %v956_v52, %v955_v53  ;;  %v1836_v53 = vld [vmem:[%s1968_s6 + $0x24] sm:$0xf0]  ;;  %v1170_v0 = vsel %vm2013_vm4, %v1165_v48, %v1169_v49  ;;  %v1719_v14 = vrot.slane %v1711_v4, 9  ;;  %v1804_v49 = vrot.slane %v1796_v13, 9 }
  0x5d   : > { %v1252_v39 = vpack.c.b16 %v1245_v23, %v1244_v16  ;;  %v1749_v63 = vor.u32 %v1836_v53, %v1748_v46  ;;  %v1775_v16 = vld [vmem:[%s1968_s6 + $0x34] sm:$0x1] }
  0x5e   : > { %v1195_v18 = vshll.u32 %v1775_v16, 16  ;;  %v1355_v50 = vrot.slane %v1775_v16, 5 }
  0x5f   : > { %1704 = vmatmul.msk.bf16.gmra.mxu0 %vm361_vm3, %v837_v3  ;;  %v1772_v3 = vld [vmem:[%s1968_s6 + $0x28] sm:$0xf] }
  0x60   : > { %1627 = vmatmul.msk.bf16.gmra.mxu1 %vm361_vm3, %v1619_v6  ;;  %v1709_v6 = vld [vmem:[%s1968_s6 + $0x20] sm:$0xe]  ;;  %v1172_v36 = vshrl.u32 %v1772_v3, 16  ;;  %v1175_v15 = vshll.u32 %v1772_v3, 16  ;;  %v1710_v3 = vld [vmem:[%s1968_s6 + $0x28] sm:$0xe] }
  0x61   : > { %v1717_v21 = vrot.slane %v1709_v6, 9  ;;  %v942_v6 = vrot.slane %v2171_v33, 5  ;;  %v1718_v9 = vrot.slane %v1710_v3, 9  ;;  %v950_v3 = vrot.slane %v2201_v58, 5 }
  0x62   : > { %v1174_v34 = vrot.slane %v1172_v36, 4  ;;  %v1177_v35 = vrot.slane %v1175_v15, 5  ;;  %v1246_v36 = vunpack.c.l.b16 %v1170_v0 }
  0x63   : > { %v935_v38 = vsel %vm2071_vm7, %v1717_v21, %v934_v22  ;;  %v939_v33 = vsel %vm2071_vm7, %v1718_v9, %v938_v27  ;;  %v943_v23 = vsel %vm2071_vm7, %v1719_v14, %v942_v6  ;;  %v1779_v27 = vld [vmem:[%s1968_s6 + $0x44] sm:$0x1]  ;;  %v1781_v14 = vld [vmem:[%s1968_s6 + $0x4c] sm:$0x1] }
  0x64   : > { %1645 = vmatmul.msk.bf16.gmra.mxu2 %vm361_vm3, %v549_v28  ;;  %v1343_v28 = vrot.slane %v1769_v24, 5  ;;  %v1178_v24 = vor.u32 %v1177_v35, %v1174_v34  ;;  %v958_v45 = vunpack.c.l.b16 %v935_v38  ;;  %v1209_v35 = vshll.u32 %v1777_v5, 16 }
  0x65   : > { %v959_v37 = vunpack.c.l.b16 %v939_v33  ;;  %v1197_v38 = vrot.slane %v1195_v18, 5  ;;  %v1223_v16 = vshll.u32 %v1779_v27, 16  ;;  %v1367_v41 = vrot.slane %v1781_v14, 5 }
  0x66   : > { %v1344_v31 = vsel %vm2071_vm7, %v1801_v10, %v1343_v28  ;;  %v1179_v52 = vrot.slane %v1178_v24, 4  ;;  %v1200_v10 = vshrl.u32 %v1776_v61, 16  ;;  %v1191_v28 = vrot.slane %v1189_v62, 5  ;;  %v1837_v24 = vld [vmem:[%s1968_s6 + $0x34] sm:$0xf0] }
  0x67   : > { %v1373_v40 = vunpack.c.l.b16 %v1344_v31  ;;  %v1374_v31 = vunpack.c.l.b16 %v1348_v19 }
  0x68   : > { %v1184_v7 = vsel %vm2013_vm4, %v1179_v52, %v1183_v54  ;;  %v1202_v21 = vrot.slane %v1200_v10, 4  ;;  %v1192_v25 = vor.u32 %v1191_v28, %v1188_v12  ;;  %v1712_v52 = vld [vmem:[%s1968_s6 + $0x38] sm:$0xe]  ;;  %v1713_v54 = vld [vmem:[%s1968_s6 + $0x40] sm:$0xe] }
  0x69   : > { %v1247_v15 = vunpack.c.l.b16 %v1184_v7  ;;  %v1720_v0 = vrot.slane %v1712_v52, 9  ;;  %v1356_v7 = vsel %vm2071_vm7, %v1804_v49, %v1355_v50 }
  0x6a   : > { %1679 = vmatmul.msk.bf16.gmra.mxu3 %vm361_vm3, %v1671_v47  ;;  %v1380_v47 = vpack.c.b16 %v1373_v40, %v1372_v29  ;;  %v960_v29 = vunpack.c.l.b16 %v943_v23  ;;  %v1193_v30 = vrot.slane %v1192_v25, 4  ;;  %v1752_v40 = vld [vmem:[%s1968_s6 + $0x30] sm:$0xf]  ;;  %v1376_v12 = vunpack.c.l.b16 %v1356_v7 }
  0x6b   : > { %v1253_v26 = vpack.c.b16 %v1247_v15, %v1246_v36  ;;  %v1753_v53 = vor.u32 %v1837_v24, %v1752_v40  ;;  %v947_v57 = vsel %vm2071_vm7, %v1720_v0, %v946_v1  ;;  %v1225_v23 = vrot.slane %v1223_v16, 5 }
  0x6c   : > { %v965_v46 = vpack.c.b16 %v960_v29, %v959_v37  ;;  %v1198_v48 = vsel %vm2013_vm4, %v1193_v30, %v1197_v38  ;;  %v1363_v38 = vrot.slane %v1779_v27, 5 }
  0x6f   : > { %1705 = vmatmul.msk.bf16.gmra.mxu0 %vm361_vm3, %v838_v56  ;;  %v964_v56 = vpack.c.b16 %v958_v45, %v957_v43  ;;  %v1211_v43 = vrot.slane %v1209_v35, 5  ;;  %v1778_v45 = vld [vmem:[%s1968_s6 + $0x40] sm:$0xf]  ;;  %v1799_v35 = vld [vmem:[%s1968_s6 + $0x48] sm:$0xe] }
  0x70   : > { %1728 = vmatmul.msk.bf16.vlgmr.msra.gmra.mxu1 %vm361_vm3, %v963_v2  ;;  %v1803_v2 = vrot.slane %v1795_v55, 9  ;;  %v1214_v55 = vshrl.u32 %v1778_v45, 16  ;;  %v1807_v13 = vrot.slane %v1799_v35, 9 }
  0x72   : > { %v1352_v20 = vsel %vm2071_vm7, %v1803_v2, %v1351_v8  ;;  %v1721_v2 = vrot.slane %v1713_v54, 9  ;;  %v1216_v8 = vrot.slane %v1214_v55, 4 }
  0x73   : > { %v1375_v32 = vunpack.c.l.b16 %v1352_v20  ;;  %v1237_v20 = vshll.u32 %v1781_v14, 16 }
  0x74   : > { %1762 = vmatmul.msk.bf16.vlgmr.msra.gmra.mxu2 %vm361_vm3, %v1745_v17  ;;  %v1203_v17 = vshll.u32 %v1776_v61, 16  ;;  %v951_v58 = vsel %vm2071_vm7, %v1721_v2, %v950_v3 }
  0x75   : > { %v1239_v18 = vrot.slane %v1237_v20, 5 }
  0x76   : > { %v1205_v22 = vrot.slane %v1203_v17, 5  ;;  %v1360_v17 = vsel %vm2071_vm7, %v1805_v51, %v1359_v59 }
  0x77   : > { %v1377_v36 = vunpack.c.l.b16 %v1360_v17 }
  0x78   : > { %v1206_v34 = vor.u32 %v1205_v22, %v1202_v21  ;;  %v961_v21 = vunpack.c.l.b16 %v947_v57  ;;  %v962_v22 = vunpack.c.l.b16 %v951_v58 }
  0x79   : > { %v1382_v5 = vpack.c.b16 %v1377_v36, %v1376_v12 }
  0x7a   : > { %1788 = vmatmul.msk.bf16.vlgmr.msra.gmra.mxu3 %vm361_vm3, %v1252_v39  ;;  %v1381_v39 = vpack.c.b16 %v1375_v32, %v1374_v31  ;;  %v1207_v42 = vrot.slane %v1206_v34, 4  ;;  %v966_v31 = vpack.c.b16 %v962_v22, %v961_v21  ;;  %v1756_v32 = vld [vmem:[%s1968_s6 + $0x40] sm:$0xf]  ;;  %v1838_v34 = vld [vmem:[%s1968_s6 + $0x44] sm:$0xf0] }
  0x7c   : > { %v1212_v61 = vsel %vm2013_vm4, %v1207_v42, %v1211_v43 }
  0x7d   : > { %v1249_v4 = vunpack.c.l.b16 %v1212_v61 }
  0x7f   : > { %1814 = vmatmul.msk.bf16.vlgmr.msra.gmra.mxu0 %vm361_vm3, %v1380_v47  ;;  %v1780_v47 = vld [vmem:[%s1968_s6 + $0x48] sm:$0xf] }
  0x80   : > { %1729 = vmatmul.msk.bf16.gmra.mxu1 %vm361_vm3, %v964_v56  ;;  %v1217_v56 = vshll.u32 %v1778_v45, 16  ;;  %v1228_v60 = vshrl.u32 %v1780_v47, 16  ;;  %v1231_v62 = vshll.u32 %v1780_v47, 16  ;;  %v1368_v45 = vsel %vm2071_vm7, %v1807_v13, %v1367_v41 }
  0x81   : > { %v1379_v44 = vunpack.c.l.b16 %v1368_v45 }
  0x82   : > { %v1219_v10 = vrot.slane %v1217_v56, 5  ;;  %v1230_v6 = vrot.slane %v1228_v60, 4  ;;  %v1233_v9 = vrot.slane %v1231_v62, 5 }
  0x84   : > { %1763 = vmatmul.msk.bf16.gmra.mxu2 %vm361_vm3, %v1749_v63  ;;  %v1248_v63 = vunpack.c.l.b16 %v1198_v48  ;;  %v1220_v15 = vor.u32 %v1219_v10, %v1216_v8  ;;  %v1234_v19 = vor.u32 %v1233_v9, %v1230_v6 }
  0x86   : > { %v1254_v28 = vpack.c.b16 %v1249_v4, %v1248_v63  ;;  %v1221_v33 = vrot.slane %v1220_v15, 4  ;;  %v1235_v25 = vrot.slane %v1234_v19, 4 }
  0x88   : > { %v1226_v29 = vsel %vm2013_vm4, %v1221_v33, %v1225_v23  ;;  %v1240_v40 = vsel %vm2013_vm4, %v1235_v25, %v1239_v18 }
  0x89   : > { %v1250_v24 = vunpack.c.l.b16 %v1226_v29  ;;  %v1251_v42 = vunpack.c.l.b16 %v1240_v40 }
  0x8a   : > { %1789 = vmatmul.msk.bf16.gmra.mxu3 %vm361_vm3, %v1253_v26  ;;  %v1798_v26 = vld [vmem:[%s1968_s6 + $0x40] sm:$0xe] }
  0x8b   : > { %v1806_v30 = vrot.slane %v1798_v26, 9  ;;  %v1255_v47 = vpack.c.b16 %v1251_v42, %v1250_v24 }
  0x8d   : > { %v1364_v43 = vsel %vm2071_vm7, %v1806_v30, %v1363_v38 }
  0x8e   : > { %v1378_v48 = vunpack.c.l.b16 %v1364_v43  ;;  %v2381_v43 = vld [vmem:[%s2446_s2] ss:$0 sm:$0xff] }
  0x8f   : > { %1815 = vmatmul.msk.bf16.gmra.mxu0 %vm361_vm3, %v1381_v39  ;;  %v1757_v39 = vor.u32 %v1838_v34, %v1756_v32 }
  0x90   : > { %1730 = vmatmul.msk.bf16.gmra.mxu1 %vm361_vm3, %v965_v46  ;;  %v1383_v50 = vpack.c.b16 %v1379_v44, %v1378_v48 }
  0x94   : > { %1764 = vmatmul.msk.bf16.gmra.mxu2 %vm361_vm3, %v1753_v53 }
  0x9a   : > { %1790 = vmatmul.msk.bf16.gmra.mxu3 %vm361_vm3, %v1254_v28 }
  0x9d   : > { %v2318_v37 = vpop.f32.mrf.mxu1 }
  0x9f   : > { %1816 = vmatmul.msk.bf16.gmra.mxu0 %vm361_vm3, %v1382_v5 }
  0xa0   : > { %1731 = vmatmul.msk.bf16.gmra.mxu1 %vm361_vm3, %v966_v31 }
  0xa4   : > { %1765 = vmatmul.msk.bf16.gmra.mxu2 %vm361_vm3, %v1757_v39 }
  0xa5   : > { %v2331_v46 = vpop.f32.mrf.mxu1 }
  0xa7   : > { %v2333_v49 = vpop.f32.mrf.mxu2 }
  0xaa   : > { %1791 = vmatmul.msk.bf16.gmra.mxu3 %vm361_vm3, %v1255_v47 }
  0xac   : > { %v387_v51 = vpop.f32.mrf.mxu0 }
  0xad   : > { %v2336_v53 = vpop.f32.mrf.mxu3  ;;  %v456_v52 = vpop.f32.mrf.mxu1 }
  0xae   : > { %v457_v20 = vadd.f32 %v456_v52, %v387_v51 }
  0xaf   : > { %1817 = vmatmul.msk.bf16.gmra.mxu0 %vm361_vm3, %v1383_v50  ;;  %v2339_v54 = vpop.f32.mrf.mxu2 }
  0xb4   : > { %v389_v11 = vpop.f32.mrf.mxu0 }
  0xb5   : > { %v2341_v55 = vpop.f32.mrf.mxu3  ;;  %v458_v56 = vpop.f32.mrf.mxu1 }
  0xb6   : > { %v459_v18 = vadd.f32 %v458_v56, %v389_v11 }
  0xb7   : > { %v579_v61 = vpop.f32.mrf.mxu2 }
  0xb8   : > { %v599_v5 = vadd.f32 %v579_v61, %v457_v20 }
  0xbc   : > { %v868_v59 = vpop.f32.mrf.mxu0 }
  0xbd   : > { %v668_v60 = vpop.f32.mrf.mxu3  ;;  %v461_v62 = vpop.f32.mrf.mxu1 }
  0xbe   : > { %v688_v23 = vadd.f32 %v668_v60, %v599_v5  ;;  %v462_v40 = vadd.f32 %v461_v62, %v2318_v37 }
  0xbf   : > { %v581_v63 = vpop.f32.mrf.mxu2 }
  0xc0   : > { %v600_v32 = vadd.f32 %v581_v63, %v459_v18  ;;  %v888_v34 = vadd.f32 %v868_v59, %v688_v23 }
  0xc4   : > { %v870_v0 = vpop.f32.mrf.mxu0 }
  0xc5   : > { %v670_v1 = vpop.f32.mrf.mxu3  ;;  %v463_v2 = vpop.f32.mrf.mxu1 }
  0xc6   : > { %v689_v30 = vadd.f32 %v670_v1, %v600_v32  ;;  %v464_v11 = vadd.f32 %v463_v2, %v2331_v46 }
  0xc7   : > { %v584_v3 = vpop.f32.mrf.mxu2 }
  0xc8   : > { %v601_v24 = vadd.f32 %v584_v3, %v462_v40  ;;  %v889_v45 = vadd.f32 %v870_v0, %v689_v30 }
  0xcc   : > { %v873_v4 = vpop.f32.mrf.mxu0 }
  0xcd   : > { %v673_v7 = vpop.f32.mrf.mxu3  ;;  %v2343_v8 = vpop.f32.mrf.mxu1 }
  0xce   : > { %v690_v50 = vadd.f32 %v673_v7, %v601_v24  ;;  %v467_v5 = vadd.f32 %v2343_v8, %v2333_v49 }
  0xcf   : > { %v586_v10 = vpop.f32.mrf.mxu2 }
  0xd0   : > { %v602_v61 = vadd.f32 %v586_v10, %v464_v11  ;;  %v890_v0 = vadd.f32 %v873_v4, %v690_v50 }
  0xd4   : > { %v2345_v17 = vpop.f32.mrf.mxu0 }
  0xd5   : > { %v675_v27 = vpop.f32.mrf.mxu3  ;;  %v2347_v6 = vpop.f32.mrf.mxu1 }
  0xd6   : > { %v691_v7 = vadd.f32 %v675_v27, %v602_v61 }
  0xd7   : > { %v2349_v9 = vpop.f32.mrf.mxu2 }
  0xd8   : > { %v603_v4 = vadd.f32 %v2349_v9, %v467_v5  ;;  %v469_v9 = vadd.f32 %v2347_v6, %v2339_v54 }
  0xdc   : > { %v2351_v14 = vpop.f32.mrf.mxu0 }
  0xdd   : > { %v2353_v12 = vpop.f32.mrf.mxu3  ;;  %v2355_v57 = vpop.f32.mrf.mxu1 }
  0xdf   : > { %v2357_v58 = vpop.f32.mrf.mxu2 }
  0xe4   : > { %v2359_v28 = vpop.f32.mrf.mxu0 }
  0xe5   : > { %v2361_v36 = vpop.f32.mrf.mxu3  ;;  %v2363_v15 = vpop.f32.mrf.mxu1 }
  0xe7   : > { %v2365_v16 = vpop.f32.mrf.mxu2 }
  0xec   : > { %v2367_v19 = vpop.f32.mrf.mxu0 }
  0xed   : > { %v2369_v21 = vpop.f32.mrf.mxu3  ;;  %v996_v22 = vpop.f32.mrf.mxu1 }
  0xee   : > { %v1016_v29 = vadd.f32 %v996_v22, %v888_v34  ;;  %v891_v34 = vadd.f32 %v2345_v17, %v691_v7 }
  0xef   : > { %v2371_v33 = vpop.f32.mrf.mxu2 }
  0xf4   : > { %v2373_v25 = vpop.f32.mrf.mxu0 }
  0xf5   : > { %v2375_v26 = vpop.f32.mrf.mxu3  ;;  %v998_v31 = vpop.f32.mrf.mxu1 }
  0xf6   : > { %v1017_v44 = vadd.f32 %v998_v31, %v889_v45 }
  0xf7   : > { %v1085_v35 = vpop.f32.mrf.mxu2 }
  0xf8   : > { %v1105_v38 = vadd.f32 %v1085_v35, %v1016_v29 }
  0xfc   : > { %v1413_v39 = vpop.f32.mrf.mxu0 }
  0xfd   : > { %v1285_v13 = vpop.f32.mrf.mxu3  ;;  %v1001_v41 = vpop.f32.mrf.mxu1 }
  0xfe   : > { %v1305_v42 = vadd.f32 %v1285_v13, %v1105_v38  ;;  %v1018_v2 = vadd.f32 %v1001_v41, %v890_v0  ;;  %v604_v41 = vadd.f32 %v2357_v58, %v469_v9  ;;  %v472_v58 = vadd.f32 %v2355_v57, %v2336_v53 }
  0xff   : > { %v1087_v47 = vpop.f32.mrf.mxu2 }
 0x100   : > { %v1433_v48 = vadd.f32 %v1413_v39, %v1305_v42  ;;  %v1106_v52 = vadd.f32 %v1087_v47, %v1017_v44  ;;  %v692_v39 = vadd.f32 %v2353_v12, %v603_v4 }
 0x102   : > { %v1445_v51 = vadd.f32 %v2381_v43, %v1433_v48  ;;  %v892_v45 = vadd.f32 %v2351_v14, %v692_v39 }
 0x104   : > { %v1415_v37 = vpop.f32.mrf.mxu0  ;;  %vm1453_vm8 = vcmp.ge.f32.partialorder %v1445_v51, 0.0  ;;  %v1461_v56 = vmul.f32 0.1, %v1445_v51 }
 0x105   : > { %v1287_v59 = vpop.f32.mrf.mxu3  ;;  %v1003_v60 = vpop.f32.mrf.mxu1 }
 0x106   : > { %v1469_v62 = vsel %vm1453_vm8, %v1445_v51, %v1461_v56  ;;  %v1306_v63 = vadd.f32 %v1287_v59, %v1106_v52  ;;  %v1019_v38 = vadd.f32 %v1003_v60, %v891_v34  ;;  %v693_v51 = vadd.f32 %v2361_v36, %v604_v41 }
 0x107   : > { %v1090_v1 = vpop.f32.mrf.mxu2  ;;  %v1477_v3 = vpack.c.bf16 %v1469_v62, %v1469_v62 }
 0x108   : > { %v1434_v46 = vadd.f32 %v1415_v37, %v1306_v63  ;;  %v1107_v20 = vadd.f32 %v1090_v1, %v1018_v2  ;;  %v605_v37 = vadd.f32 %v2365_v16, %v472_v58  ;;  %v893_v59 = vadd.f32 %v2359_v28, %v693_v51 }
 0x109   : > { %1486 = vst.msk [vmem:[%s2389_s11] sm:$0xf] %vm1485_vm9, %v1477_v3  ;;  %v474_v16 = vadd.f32 %v2363_v15, %v2341_v55 }
 0x10a   : > { %v1446_v10 = vadd.f32 %v2381_v43, %v1434_v46  ;;  %v694_v0 = vadd.f32 %v2369_v21, %v605_v37 }
 0x10b   : > { %v606_v2 = vadd.f32 %v2371_v33, %v474_v16 }
 0x10c   : > { %v1418_v22 = vpop.f32.mrf.mxu0  ;;  %vm1454_vm10 = vcmp.ge.f32.partialorder %v1446_v10, 0.0  ;;  %v1462_v23 = vmul.f32 0.1, %v1446_v10 }
 0x10d   : > { %v1290_v18 = vpop.f32.mrf.mxu3  ;;  %v1006_v29 = vpop.f32.mrf.mxu1 }
 0x10e   : > { %v1470_v31 = vsel %vm1454_vm10, %v1446_v10, %v1462_v23  ;;  %v1307_v32 = vadd.f32 %v1290_v18, %v1107_v20  ;;  %v1020_v44 = vadd.f32 %v1006_v29, %v892_v45  ;;  %v894_v20 = vadd.f32 %v2367_v19, %v694_v0 }
 0x10f   : > { %v1092_v35 = vpop.f32.mrf.mxu2  ;;  %v1478_v27 = vpack.c.bf16 %v1470_v31, %v1470_v31  ;;  %v695_v18 = vadd.f32 %v2375_v26, %v606_v2 }
 0x110   : > { %v1435_v30 = vadd.f32 %v1418_v22, %v1307_v32  ;;  %v1108_v8 = vadd.f32 %v1092_v35, %v1019_v38 }
 0x111   : > { %1487 = vst.msk [vmem:[%s2389_s11 + $0x4] sm:$0xf] %vm1485_vm9, %v1478_v27  ;;  %v895_v19 = vadd.f32 %v2373_v25, %v695_v18 }
 0x112   : > { %v1447_v49 = vadd.f32 %v2381_v43, %v1435_v30 }
 0x114   : > { %v1420_v40 = vpop.f32.mrf.mxu0  ;;  %vm1455_vm11 = vcmp.ge.f32.partialorder %v1447_v49, 0.0  ;;  %v1463_v13 = vmul.f32 0.1, %v1447_v49 }
 0x115   : > { %v1292_v17 = vpop.f32.mrf.mxu3  ;;  %v1008_v50 = vpop.f32.mrf.mxu1 }
 0x116   : > { %v1471_v24 = vsel %vm1455_vm11, %v1447_v49, %v1463_v13  ;;  %v1308_v42 = vadd.f32 %v1292_v17, %v1108_v8  ;;  %v1021_v63 = vadd.f32 %v1008_v50, %v893_v59 }
 0x117   : > { %v1095_v47 = vpop.f32.mrf.mxu2  ;;  %v1479_v48 = vpack.c.bf16 %v1471_v24, %v1471_v24 }
 0x118   : > { %v1436_v12 = vadd.f32 %v1420_v40, %v1308_v42  ;;  %v1109_v6 = vadd.f32 %v1095_v47, %v1020_v44 }
 0x119   : > { %1488 = vst.msk [vmem:[%s2389_s11 + $0x8] sm:$0xf] %vm1485_vm9, %v1479_v48 }
 0x11a   : > { %v1448_v54 = vadd.f32 %v2381_v43, %v1436_v12 }
 0x11c   : > { %v1423_v52 = vpop.f32.mrf.mxu0  ;;  %vm1456_vm12 = vcmp.ge.f32.partialorder %v1448_v54, 0.0  ;;  %v1464_v11 = vmul.f32 0.1, %v1448_v54 }
 0x11d   : > { %v1295_v14 = vpop.f32.mrf.mxu3  ;;  %v1011_v57 = vpop.f32.mrf.mxu1 }
 0x11e   : > { %v1472_v56 = vsel %vm1456_vm12, %v1448_v54, %v1464_v11  ;;  %v1309_v61 = vadd.f32 %v1295_v14, %v1109_v6  ;;  %v1022_v23 = vadd.f32 %v1011_v57, %v894_v20 }
 0x11f   : > { %v1097_v60 = vpop.f32.mrf.mxu2  ;;  %v1480_v62 = vpack.c.bf16 %v1472_v56, %v1472_v56 }
 0x120   : > { %v1437_v36 = vadd.f32 %v1423_v52, %v1309_v61  ;;  %v1110_v53 = vadd.f32 %v1097_v60, %v1021_v63 }
 0x121   : > { %1489 = vst.msk [vmem:[%s2389_s11 + $0xc] sm:$0xf] %vm1485_vm9, %v1480_v62 }
 0x122   : > { %v1449_v1 = vadd.f32 %v2381_v43, %v1437_v36 }
 0x124   : > { %v1425_v3 = vpop.f32.mrf.mxu0  ;;  %vm1457_vm13 = vcmp.ge.f32.partialorder %v1449_v1, 0.0  ;;  %v1465_v46 = vmul.f32 0.1, %v1449_v1 }
 0x125   : > { %v1297_v28 = vpop.f32.mrf.mxu3  ;;  %v1013_v31 = vpop.f32.mrf.mxu1 }
 0x126   : > { %v1473_v7 = vsel %vm1457_vm13, %v1449_v1, %v1465_v46  ;;  %v1310_v10 = vadd.f32 %v1297_v28, %v1110_v53  ;;  %v1023_v38 = vadd.f32 %v1013_v31, %v895_v19 }
 0x127   : > { %v1100_v22 = vpop.f32.mrf.mxu2  ;;  %v1481_v21 = vpack.c.bf16 %v1473_v7, %v1473_v7 }
 0x128   : > { %v1438_v5 = vadd.f32 %v1425_v3, %v1310_v10  ;;  %v1111_v15 = vadd.f32 %v1100_v22, %v1022_v23 }
 0x129   : > { %1490 = vst.msk [vmem:[%s2389_s11 + $0x10] sm:$0xf] %vm1485_vm9, %v1481_v21 }
 0x12a   : > { %v1450_v55 = vadd.f32 %v2381_v43, %v1438_v5 }
 0x12c   : > { %vm1458_vm14 = vcmp.ge.f32.partialorder %v1450_v55, 0.0  ;;  %v1466_v4 = vmul.f32 0.1, %v1450_v55  ;;  %v1428_v33 = vpop.f32.mrf.mxu0 }
 0x12d   : > { %v1300_v32 = vpop.f32.mrf.mxu3 }
 0x12e   : > { %v1474_v34 = vsel %vm1458_vm14, %v1450_v55, %v1466_v4  ;;  %v1311_v35 = vadd.f32 %v1300_v32, %v1111_v15 }
 0x12f   : > { %v1482_v29 = vpack.c.bf16 %v1474_v34, %v1474_v34  ;;  %v1102_v27 = vpop.f32.mrf.mxu2 }
 0x130   : > { %v1439_v30 = vadd.f32 %v1428_v33, %v1311_v35  ;;  %v1112_v39 = vadd.f32 %v1102_v27, %v1023_v38 }
 0x131   : > { %1491 = vst.msk [vmem:[%s2389_s11 + $0x14] sm:$0xf] %vm1485_vm9, %v1482_v29 }
 0x132   : > { %v1451_v26 = vadd.f32 %v2381_v43, %v1439_v30 }
 0x134   : > { %vm1459_vm15 = vcmp.ge.f32.partialorder %v1451_v26, 0.0  ;;  %v1467_v49 = vmul.f32 0.1, %v1451_v26  ;;  %v1430_v17 = vpop.f32.mrf.mxu0 }
 0x135   : > { %v1302_v8 = vpop.f32.mrf.mxu3 }
 0x136   : > { %v1475_v40 = vsel %vm1459_vm15, %v1451_v26, %v1467_v49  ;;  %v1312_v9 = vadd.f32 %v1302_v8, %v1112_v39 }
 0x137   : > { %v1483_v13 = vpack.c.bf16 %v1475_v40, %v1475_v40 }
 0x138   : > { %v1440_v41 = vadd.f32 %v1430_v17, %v1312_v9 }
 0x139   : > { %1492 = vst.msk [vmem:[%s2389_s11 + $0x18] sm:$0xf] %vm1485_vm9, %v1483_v13 }
 0x13a   : > { %v1452_v25 = vadd.f32 %v2381_v43, %v1440_v41 }
 0x13c   : > { %vm1460_vm0 = vcmp.ge.f32.partialorder %v1452_v25, 0.0  ;;  %v1468_v24 = vmul.f32 0.1, %v1452_v25 }
 0x13e   : > { %v1476_v42 = vsel %vm1460_vm0, %v1452_v25, %v1468_v24 }
 0x13f   : > { %v1484_v45 = vpack.c.bf16 %v1476_v42, %v1476_v42 }
 0x141   : > { %1493 = vst.msk [vmem:[%s2389_s11 + $0x1c] sm:$0xf] %vm1485_vm9, %v1484_v45 }
 0x142 PF: > { %s13_s14 = sadd.s32 1, %s1893_s14   ;;  %s2452_s12 = smov %s1889_s13 }
 0x143   : > { %p10_p5 = scmp.ge.s32.totalorder %s13_s14, 4   ;;  %s2453_s13 = smov %s2455_s15 }
 0x145   :  { %12 = sbr.rel (!%p10_p5) target bundleno = 2 (0x2), region = 72 }

// kernel: _lambda_.4
= control target key start
LH: loop header
LB: loop body
LE: loop exit
PB: predicated region body
PF: predicated region fallthrough
CT: control target
= control target key end

     0   :  { %s1256_s12 = smov 0   ;;  %s1258_s13 = smov 0   ;;  %s1501_s0 = inlined_call_operand.vmem [shape: bf16[2,1,6,10,16], index: 0, kind: input, shape index: {}]   ;;  %s1502_s1 = inlined_call_operand.vmem [shape: bf16[9,16,8], index: 1, kind: input, shape index: {}]   ;;  %s1503_s2 = inlined_call_operand.vmem [shape: f32[1,8], index: 2, kind: input, shape index: {}]   ;;  %s1504_s3 = inlined_call_operand.vmem [shape: bf16[2,1,32,8], index: 3, kind: output, shape index: {}]  }
   0x1   :  { %s1260_s14 = smov 0  }
   0x2 LB: > { %s25_s15 = sadd.s32 1, %s1230_s13  ;;  %p1025_p0 = scmp.ge.s32.totalorder %s1234_s14, 1  ;;  %s1234_s14 = sphi %s1260_s14, %s13_s14   ;;  %s1230_s13 = sphi %s1258_s13, %s1510_s13   ;;  %s1226_s12 = sphi %s1256_s12, %s1509_s12  }
   0x3   : > { %p27_p1 = scmp.ge.s32.totalorder %s25_s15, 2  ;;  %p157_p2 = scmp.lt.s32.totalorder %s1234_s14, 3 }
   0x5   : > { %s1512_s15 = smov (%p27_p1, %s25_s15), 0  ;;  %p158_p3 = pnand %p1025_p0, %p157_p2 }
   0x6   : > { %p189_p4 = scmp.lt.s32.totalorder (!%p158_p3), %s1226_s12, 1 }
   0x7   : > { %161 = sbr.rel (%p158_p3) target bundleno = 248 (0xf8), region = 32 }
   0xc   : > { %v1173_v0 = vld [vmem:[%s1502_s1 + $0x8] sm:$0xff]  ;;  %v1172_v1 = vld [vmem:[%s1502_s1] sm:$0xff]  ;;  %v1174_v2 = vld [vmem:[%s1502_s1 + $0x10] sm:$0xff]  ;;  %s1514_s12 = smov (!%p189_p4, %s1226_s12), 1  ;;  %vm218_vm0 = vsmask.f32 3328 }
   0xd   : > { %306 = vmatpush.bf16.msra.mxu0 %v1173_v0  ;;  %1185 = vmatpush.bf16.msra.mxu1 %v1173_v0  ;;  %v1177_v3 = vld [vmem:[%s1502_s1 + $0x18] sm:$0xff]  ;;  %v1178_v4 = vld [vmem:[%s1502_s1 + $0x20] sm:$0xff]  ;;  %v1182_v5 = vld [vmem:[%s1502_s1 + $0x30] sm:$0xff]  ;;  %s1186_s30 = smul.u32 48, %s1514_s12  ;;  %vm219_vm1 = vsmask.f32 7440 }
   0xe   : > { %418 = vmatpush.bf16.msra.mxu2 %v1174_v2  ;;  %v1183_v6 = vld [vmem:[%s1502_s1 + $0x38] sm:$0xff]  ;;  %471 = vmatpush.bf16.msra.mxu3 %v1177_v3  ;;  %vm371_vm2 = vcmask 1042432   ;;  %vm372_vm3 = vcmask 1046532   ;;  %vm1319_vm4 = vmor %vm218_vm0, %vm219_vm1  ;;  %vm292_vm6 = vcmask 130048   ;;  %s1169_s17 = sshll.u32 %s1514_s12, 4  ;;  %vm924_vm8 = vcmask 60416  }
   0xf   : > { %s1301_s6 = scalar_lea.vmem %s1501_s0, %s1186_s30  ;;  %vm1328_vm5 = vmor %vm371_vm2, %vm372_vm3  ;;  %s1482_s20 = scalar_lea.vmem %s1504_s3, %s1169_s17 }
  0x10   : > { %v208_v7 = vld [vmem:[%s1301_s6] sm:$0xf]  ;;  %v209_v8 = vld [vmem:[%s1301_s6 + $0x8] sm:$0xf]  ;;  %v214_v9 = vld [vmem:[%s1301_s6 + $0x4] sm:$0x1] }
  0x11   : > { %347 = vmatpush.bf16.msrb.mxu1 %v1172_v1  ;;  %579 = vmatpush.bf16.msrb.mxu0 %v1178_v4  ;;  %v215_v10 = vld [vmem:[%s1301_s6 + $0xc] sm:$0x1]  ;;  %v222_v11 = vshrl.u32 %v208_v7, 16  ;;  %v225_v12 = vshll.u32 %v208_v7, 16  ;;  %v231_v13 = vshll.u32 %v214_v9, 16  ;;  %v236_v14 = vshrl.u32 %v209_v8, 16 }
  0x12   : > { %704 = vmatpush.bf16.msrb.mxu2 %v1182_v5  ;;  %812 = vmatpush.bf16.msrb.mxu3 %v1183_v6  ;;  %v239_v15 = vshll.u32 %v209_v8, 16  ;;  %v245_v16 = vshll.u32 %v215_v10, 16  ;;  %v210_v17 = vld [vmem:[%s1301_s6 + $0x10] sm:$0xf]  ;;  %v211_v18 = vld [vmem:[%s1301_s6 + $0x18] sm:$0xf] }
  0x13   : > { %v224_v19 = vrot.slane %v222_v11, 4  ;;  %v227_v20 = vrot.slane %v225_v12, 5  ;;  %v233_v21 = vrot.slane %v231_v13, 5  ;;  %v238_v22 = vrot.slane %v236_v14, 4  ;;  %v1310_v23 = vld [vmem:[%s1301_s6 + $0x14] sm:$0x1] }
  0x14   : > { %v241_v24 = vrot.slane %v239_v15, 5  ;;  %v247_v25 = vrot.slane %v245_v16, 5  ;;  %v1313_v26 = vld [vmem:[%s1301_s6 + $0x1c] sm:$0x1]  ;;  %v250_v27 = vshrl.u32 %v210_v17, 16  ;;  %v253_v28 = vshll.u32 %v210_v17, 16 }
  0x15   : > { %v228_v29 = vor.u32 %v227_v20, %v224_v19  ;;  %v259_v30 = vshll.u32 %v1310_v23, 16  ;;  %v264_v31 = vshrl.u32 %v211_v18, 16  ;;  %v267_v32 = vshll.u32 %v211_v18, 16  ;;  %v359_v33 = vld [vmem:[%s1301_s6] sm:$0xe]  ;;  %v1179_v19 = vld [vmem:[%s1502_s1 + $0x28] sm:$0xff] }
  0x16   : > { %v242_v35 = vor.u32 %v241_v24, %v238_v22  ;;  %v252_v36 = vrot.slane %v250_v27, 4  ;;  %v255_v37 = vrot.slane %v253_v28, 5  ;;  %v273_v38 = vshll.u32 %v1313_v26, 16  ;;  %v360_v39 = vld [vmem:[%s1301_s6 + $0x8] sm:$0xe]  ;;  %v1184_v6 = vld [vmem:[%s1502_s1 + $0x40] sm:$0xff] }
  0x17   : > { %v229_v40 = vrot.slane %v228_v29, 4  ;;  %v261_v41 = vrot.slane %v259_v30, 5  ;;  %v266_v42 = vrot.slane %v264_v31, 4  ;;  %v269_v43 = vrot.slane %v267_v32, 5  ;;  %v1071_v44 = vld [vmem:[%s1301_s6 + $0x8] sm:$0xf] }
  0x18   : > { %v243_v45 = vrot.slane %v242_v35, 4  ;;  %v256_v46 = vor.u32 %v255_v37, %v252_v36  ;;  %v275_v47 = vrot.slane %v273_v38, 5  ;;  %v1051_v49 = vrot.slane %v359_v33, 9  ;;  %v1175_v50 = vld [vmem:[%s1301_s6 + $0xc] sm:$0xf0] }
  0x19   : > { %v234_v51 = vsel %vm1319_vm4, %v229_v40, %v233_v21  ;;  %v270_v52 = vor.u32 %v269_v43, %v266_v42  ;;  %v376_v53 = vrot.slane %v214_v9, 5  ;;  %v1052_v54 = vrot.slane %v360_v39, 9  ;;  %v1083_v63 = vld [vmem:[%s1301_s6 + $0x8] sm:$0xf]  ;;  %v1341_v0 = vld [vmem:[%s1301_s6 + $0xc] sm:$0x1] }
  0x1a   : > { %v248_v55 = vsel %vm1319_vm4, %v243_v45, %v247_v25  ;;  %v280_v56 = vunpack.c.l.b16 %v234_v51  ;;  %v257_v57 = vrot.slane %v256_v46, 4  ;;  %v380_v58 = vrot.slane %v215_v10, 5  ;;  %v1085_v4 = vld [vmem:[%s1301_s6 + $0x10] sm:$0xf]  ;;  %v1349_v5 = vld [vmem:[%s1301_s6 + $0x14] sm:$0x1] }
  0x1b   : > { %v281_v59 = vunpack.c.l.b16 %v248_v55  ;;  %v271_v60 = vrot.slane %v270_v52, 4  ;;  %v377_v61 = vsel %vm1328_vm5, %v1051_v49, %v376_v53  ;;  %v1072_v62 = vor.u32 %v1175_v50, %v1071_v44  ;;  %v361_v20 = vld [vmem:[%s1301_s6 + $0x10] sm:$0xe]  ;;  %v362_v25 = vld [vmem:[%s1301_s6 + $0x18] sm:$0xe] }
  0x1c   : > { %v262_v1 = vsel %vm1319_vm4, %v257_v57, %v261_v41  ;;  %v381_v2 = vsel %vm1328_vm5, %v1052_v54, %v380_v58  ;;  %v393_v3 = vunpack.c.l.b16 %v377_v61  ;;  %v496_v12 = vshrl.u32 %v1083_v63, 16  ;;  %v1087_v29 = vld [vmem:[%s1301_s6 + $0x18] sm:$0xf]  ;;  %v1089_v40 = vld [vmem:[%s1301_s6 + $0x20] sm:$0xf] }
  0x1d   : > { %v284_v7 = vpack.c.b16 %v281_v59, %v280_v56  ;;  %v276_v8 = vsel %vm1319_vm4, %v271_v60, %v275_v47  ;;  %v282_v9 = vunpack.c.l.b16 %v262_v1  ;;  %v394_v10 = vunpack.c.l.b16 %v381_v2  ;;  %1081 = vmatmul.msk.bf16.vlgmr.msra.gmra.mxu3 %vm292_vm6, %v1072_v62  ;;  %v1075_v43 = vld [vmem:[%s1301_s6 + $0x18] sm:$0xf]  ;;  %v1176_v44 = vld [vmem:[%s1301_s6 + $0x1c] sm:$0xf0]  ;;  %v1380_v47 = vld [vmem:[%s1301_s6 + $0x1c] sm:$0x1] }
  0x1e   : > { %v283_v11 = vunpack.c.l.b16 %v276_v8  ;;  %v499_v13 = vshll.u32 %v1083_v63, 16  ;;  %v505_v14 = vshll.u32 %v1341_v0, 16  ;;  %v510_v16 = vshrl.u32 %v1085_v4, 16  ;;  %v1385_v52 = vld [vmem:[%s1301_s6 + $0x24] sm:$0x1] }
  0x1f   : > { %1035 = vmatmul.msk.bf16.vlgmr.msra.gmra.mxu0 %vm292_vm6, %v284_v7  ;;  %v397_v15 = vpack.c.b16 %v394_v10, %v393_v3  ;;  %v513_v17 = vshll.u32 %v1085_v4, 16  ;;  %v519_v18 = vshll.u32 %v1349_v5, 16  ;;  %v498_v22 = vrot.slane %v496_v12, 4  ;;  %v1135_v55 = vld [vmem:[%s1301_s6 + $0x10] sm:$0xf] }
  0x20   : > { %v285_v21 = vpack.c.b16 %v283_v11, %v282_v9  ;;  %v501_v24 = vrot.slane %v499_v13, 5  ;;  %884 = vmatpush.bf16.msra.mxu0 %v1184_v6  ;;  %v512_v27 = vrot.slane %v510_v16, 4  ;;  %v507_v31 = vrot.slane %v505_v14, 5  ;;  %v1389_v59 = vld [vmem:[%s1301_s6 + $0x14] sm:$0x1] }
  0x21   : > { %1061 = vmatmul.msk.bf16.vlgmr.msra.gmra.mxu2 %vm292_vm6, %v397_v15  ;;  %v515_v28 = vrot.slane %v513_v17, 5  ;;  %v1053_v32 = vrot.slane %v361_v20, 9  ;;  %v384_v33 = vrot.slane %v1310_v23, 5  ;;  %v521_v36 = vrot.slane %v519_v18, 5  ;;  %v1137_v60 = vld [vmem:[%s1301_s6 + $0x18] sm:$0xf] }
  0x22   : > { %1036 = vmatmul.msk.bf16.vlgmr.msra.gmra.mxu1 %vm292_vm6, %v285_v21  ;;  %v502_v30 = vor.u32 %v501_v24, %v498_v22  ;;  %v1054_v37 = vrot.slane %v362_v25, 9  ;;  %v388_v38 = vrot.slane %v1313_v26, 5  ;;  %v524_v41 = vshrl.u32 %v1087_v29, 16  ;;  %v1039_v61 = vld [vmem:[%s1301_s6] sm:$0xf] }
  0x23   : > { %v516_v35 = vor.u32 %v515_v28, %v512_v27  ;;  %651 = vmatpush.bf16.msra.mxu1 %v1179_v19  ;;  %v527_v45 = vshll.u32 %v1087_v29, 16  ;;  %v385_v46 = vsel %vm1328_vm5, %v1053_v32, %v384_v33  ;;  %v538_v54 = vshrl.u32 %v1089_v40, 16  ;;  %v1395_v6 = vld [vmem:[%s1301_s6 + $0x1c] sm:$0x1]  ;;  %v1170_v9 = vld [vmem:[%s1301_s6 + $0x4] sm:$0xf0] }
  0x24   : > { %v503_v39 = vrot.slane %v502_v30, 4  ;;  %v389_v26 = vsel %vm1328_vm5, %v1054_v37, %v388_v38  ;;  %v526_v49 = vrot.slane %v524_v41, 4  ;;  %v1076_v57 = vor.u32 %v1176_v44, %v1075_v43  ;;  %v1139_v37 = vld [vmem:[%s1301_s6 + $0x20] sm:$0xf]  ;;  %v1141_v38 = vld [vmem:[%s1301_s6 + $0x28] sm:$0xf] }
  0x25   : > { %v517_v42 = vrot.slane %v516_v35, 4  ;;  %v529_v53 = vrot.slane %v527_v45, 5  ;;  %v541_v58 = vshll.u32 %v1089_v40, 16  ;;  %v395_v62 = vunpack.c.l.b16 %v385_v46  ;;  %v1416_v44 = vld [vmem:[%s1301_s6 + $0x24] sm:$0x1] }
  0x26   : > { %v508_v23 = vsel %vm1319_vm4, %v503_v39, %v507_v31  ;;  %v396_v63 = vunpack.c.l.b16 %v389_v26  ;;  %v533_v1 = vshll.u32 %v1380_v47, 16  ;;  %v540_v2 = vrot.slane %v538_v54, 4  ;;  %v1421_v54 = vld [vmem:[%s1301_s6 + $0x2c] sm:$0x1] }
  0x27   : > { %v522_v50 = vsel %vm1319_vm4, %v517_v42, %v521_v36  ;;  %v554_v51 = vunpack.c.l.b16 %v508_v23  ;;  %v530_v3 = vor.u32 %v529_v53, %v526_v49  ;;  %v543_v4 = vrot.slane %v541_v58, 5  ;;  %v1101_v23 = vld [vmem:[%s1301_s6 + $0x18] sm:$0xe] }
  0x28   : > { %v555_v56 = vunpack.c.l.b16 %v522_v50  ;;  %v729_v7 = vshrl.u32 %v1135_v55, 16  ;;  %v732_v8 = vshll.u32 %v1135_v55, 16  ;;  %v547_v11 = vshll.u32 %v1385_v52, 16  ;;  %v1102_v50 = vld [vmem:[%s1301_s6 + $0x20] sm:$0xe] }
  0x29   : > { %v738_v12 = vshll.u32 %v1389_v59, 16  ;;  %v743_v13 = vshrl.u32 %v1137_v60, 16  ;;  %v544_v14 = vor.u32 %v543_v4, %v540_v2  ;;  %v746_v17 = vshll.u32 %v1137_v60, 16  ;;  %v1123_v4 = vld [vmem:[%s1301_s6 + $0x10] sm:$0xf] }
  0x2a   : > { %v558_v10 = vpack.c.b16 %v555_v56, %v554_v51  ;;  %v731_v15 = vrot.slane %v729_v7, 4  ;;  %v734_v16 = vrot.slane %v732_v8, 5  ;;  %v398_v18 = vpack.c.b16 %v396_v63, %v395_v62  ;;  %v1043_v56 = vld [vmem:[%s1301_s6 + $0x10] sm:$0xf]  ;;  %v1171_v62 = vld [vmem:[%s1301_s6 + $0x14] sm:$0xf0] }
  0x2b   : > { %v745_v19 = vrot.slane %v743_v13, 4  ;;  %v752_v20 = vshll.u32 %v1395_v6, 16  ;;  %v1040_v21 = vor.u32 %v1170_v9, %v1039_v61  ;;  %v740_v24 = vrot.slane %v738_v12, 5  ;;  %v1180_v7 = vld [vmem:[%s1301_s6 + $0x14] sm:$0xf0] }
  0x2c   : > { %v735_v22 = vor.u32 %v734_v16, %v731_v15  ;;  %v748_v25 = vrot.slane %v746_v17, 5  ;;  %v531_v27 = vrot.slane %v530_v3, 4  ;;  %v535_v28 = vrot.slane %v533_v1, 5  ;;  %v1151_v17 = vld [vmem:[%s1301_s6 + $0x10] sm:$0xe] }
  0x2d   : > { %1082 = vmatmul.msk.bf16.gmra.mxu3 %vm292_vm6, %v1076_v57  ;;  %v549_v29 = vrot.slane %v547_v11, 5  ;;  %v545_v30 = vrot.slane %v544_v14, 4  ;;  %v754_v33 = vrot.slane %v752_v20, 5  ;;  %v757_v45 = vshrl.u32 %v1139_v37, 16 }
  0x2e   : > { %v736_v31 = vrot.slane %v735_v22, 4  ;;  %v749_v32 = vor.u32 %v748_v25, %v745_v19  ;;  %v536_v39 = vsel %vm1319_vm4, %v531_v27, %v535_v28  ;;  %v760_v46 = vshll.u32 %v1139_v37, 16 }
  0x2f   : > { %1097 = vmatmul.msk.bf16.vlgmr.msrb.gmra.mxu0 %vm292_vm6, %v558_v10  ;;  %v550_v40 = vsel %vm1319_vm4, %v545_v30, %v549_v29  ;;  %v771_v26 = vshrl.u32 %v1141_v38, 16  ;;  %v774_v49 = vshll.u32 %v1141_v38, 16  ;;  %v556_v51 = vunpack.c.l.b16 %v536_v39  ;;  %v1100_v29 = vld [vmem:[%s1301_s6 + $0x10] sm:$0xe] }
  0x30   : > { %v741_v35 = vsel %vm1319_vm4, %v736_v31, %v740_v24  ;;  %v750_v36 = vrot.slane %v749_v32, 4  ;;  %v557_v53 = vunpack.c.l.b16 %v550_v40  ;;  %v759_v55 = vrot.slane %v757_v45, 4  ;;  %v1099_v24 = vld [vmem:[%s1301_s6 + $0x8] sm:$0xe] }
  0x31   : > { %1062 = vmatmul.msk.bf16.gmra.mxu2 %vm292_vm6, %v398_v18  ;;  %v787_v42 = vunpack.c.l.b16 %v741_v35  ;;  %v762_v57 = vrot.slane %v760_v46, 5  ;;  %v766_v58 = vshll.u32 %v1416_v44, 16  ;;  %v773_v60 = vrot.slane %v771_v26, 4  ;;  %v1152_v18 = vld [vmem:[%s1301_s6 + $0x18] sm:$0xe] }
  0x32   : > { %1049 = vmatmul.msk.bf16.vlgmr.msrb.gmra.mxu1 %vm292_vm6, %v1040_v21  ;;  %v755_v41 = vsel %vm1319_vm4, %v750_v36, %v754_v33  ;;  %v776_v61 = vrot.slane %v774_v49, 5  ;;  %v1105_v1 = vrot.slane %v1101_v23, 9  ;;  %v617_v2 = vrot.slane %v1380_v47, 5  ;;  %v1127_v23 = vld [vmem:[%s1301_s6 + $0x20] sm:$0xf] }
  0x33   : > { %v788_v43 = vunpack.c.l.b16 %v755_v41  ;;  %v1106_v3 = vrot.slane %v1102_v50, 9  ;;  %v763_v8 = vor.u32 %v762_v57, %v759_v55  ;;  %v780_v10 = vshll.u32 %v1421_v54, 16  ;;  %v1181_v46 = vld [vmem:[%s1301_s6 + $0x24] sm:$0xf0]  ;;  %v1153_v50 = vld [vmem:[%s1301_s6 + $0x20] sm:$0xe] }
  0x34   : > { %v777_v9 = vor.u32 %v776_v61, %v773_v60  ;;  %v621_v11 = vrot.slane %v1385_v52, 5  ;;  %v559_v12 = vpack.c.b16 %v557_v53, %v556_v51  ;;  %v618_v13 = vsel %vm1328_vm5, %v1105_v1, %v617_v2  ;;  %v1154_v51 = vld [vmem:[%s1301_s6 + $0x28] sm:$0xe] }
  0x35   : > { %v791_v63 = vpack.c.b16 %v788_v43, %v787_v42  ;;  %v628_v15 = vunpack.c.l.b16 %v618_v13  ;;  %v1044_v47 = vor.u32 %v1171_v62, %v1043_v56  ;;  %v1124_v16 = vor.u32 %v1180_v7, %v1123_v4 }
  0x36   : > { %v622_v14 = vsel %vm1328_vm5, %v1106_v3, %v621_v11  ;;  %v764_v20 = vrot.slane %v763_v8, 4  ;;  %v768_v21 = vrot.slane %v766_v58, 5  ;;  %v778_v52 = vrot.slane %v777_v9, 4 }
  0x37   : > { %v629_v19 = vunpack.c.l.b16 %v622_v14  ;;  %v782_v22 = vrot.slane %v780_v10, 5  ;;  %v842_v27 = vrot.slane %v1389_v59, 5  ;;  %v846_v28 = vrot.slane %v1395_v6, 5 }
  0x38   : > { %v1155_v30 = vrot.slane %v1151_v17, 9  ;;  %v1156_v31 = vrot.slane %v1152_v18, 9  ;;  %v769_v32 = vsel %vm1319_vm4, %v764_v20, %v768_v21  ;;  %v609_v35 = vrot.slane %v1341_v0, 5 }
  0x39   : > { %v631_v25 = vpack.c.b16 %v629_v19, %v628_v15  ;;  %v783_v33 = vsel %vm1319_vm4, %v778_v52, %v782_v22  ;;  %v613_v59 = vrot.slane %v1349_v5, 5  ;;  %v1103_v6 = vrot.slane %v1099_v24, 9 }
  0x3a   : > { %v1104_v36 = vrot.slane %v1100_v29, 9  ;;  %v843_v37 = vsel %vm1328_vm5, %v1155_v30, %v842_v27  ;;  %v847_v38 = vsel %vm1328_vm5, %v1156_v31, %v846_v28  ;;  %v789_v39 = vunpack.c.l.b16 %v769_v32 }
  0x3b   : > { %v790_v40 = vunpack.c.l.b16 %v783_v33  ;;  %v610_v34 = vsel %vm1328_vm5, %v1103_v6, %v609_v35  ;;  %v859_v41 = vunpack.c.l.b16 %v843_v37  ;;  %v860_v5 = vunpack.c.l.b16 %v847_v38  ;;  %v1211_v6 = vld [vmem:[%s1503_s2] ss:$0 sm:$0xff] }
  0x3c   : > { %v614_v0 = vsel %vm1328_vm5, %v1104_v36, %v613_v59  ;;  %v626_v43 = vunpack.c.l.b16 %v610_v34  ;;  %v1128_v49 = vor.u32 %v1181_v46, %v1127_v23  ;;  %v1157_v55 = vrot.slane %v1153_v50, 9 }
  0x3d   : > { %1149 = vmatmul.msk.bf16.vlgmr.msrb.gmra.mxu3 %vm292_vm6, %v791_v63  ;;  %v792_v42 = vpack.c.b16 %v790_v40, %v789_v39  ;;  %v627_v45 = vunpack.c.l.b16 %v614_v0  ;;  %v863_v26 = vpack.c.b16 %v860_v5, %v859_v41  ;;  %v850_v56 = vrot.slane %v1416_v44, 5 }
  0x3e   : > { %v1158_v57 = vrot.slane %v1154_v51, 9  ;;  %v854_v58 = vrot.slane %v1421_v54, 5 }
  0x3f   : > { %1098 = vmatmul.msk.bf16.gmra.mxu0 %vm292_vm6, %v559_v12  ;;  %v630_v53 = vpack.c.b16 %v627_v45, %v626_v43  ;;  %v851_v60 = vsel %vm1328_vm5, %v1157_v55, %v850_v56 }
  0x40   : > { %v855_v61 = vsel %vm1328_vm5, %v1158_v57, %v854_v58  ;;  %v861_v62 = vunpack.c.l.b16 %v851_v60 }
  0x41   : > { %1133 = vmatmul.msk.bf16.vlgmr.msrb.gmra.mxu2 %vm292_vm6, %v1124_v16  ;;  %v862_v63 = vunpack.c.l.b16 %v855_v61 }
  0x42   : > { %1050 = vmatmul.msk.bf16.gmra.mxu1 %vm292_vm6, %v1044_v47 }
  0x43   : > { %v864_v1 = vpack.c.b16 %v862_v63, %v861_v62 }
  0x4d   : > { %1150 = vmatmul.msk.bf16.gmra.mxu3 %vm292_vm6, %v792_v42 }
  0x4f   : > { %1165 = vmatmul.msk.bf16.vlgmr.msra.gmra.mxu0 %vm292_vm6, %v863_v26 }
  0x51   : > { %1134 = vmatmul.msk.bf16.gmra.mxu2 %vm292_vm6, %v1128_v49 }
  0x52   : > { %1113 = vmatmul.msk.bf16.vlgmr.msra.gmra.mxu1 %vm292_vm6, %v630_v53 }
  0x5f   : > { %1166 = vmatmul.msk.bf16.gmra.mxu0 %vm292_vm6, %v864_v1 }
  0x62   : > { %1114 = vmatmul.msk.bf16.gmra.mxu1 %vm292_vm6, %v631_v25 }
  0x9c   : > { %v308_v44 = vpop.f32.mrf.mxu0 }
  0x9f   : > { %v313_v2 = vpop.f32.mrf.mxu1 }
  0xa0   : > { %v473_v4 = vpop.f32.mrf.mxu3 }
  0xa4   : > { %v310_v54 = vpop.f32.mrf.mxu0  ;;  %v420_v3 = vpop.f32.mrf.mxu2 }
  0xa7   : > { %v315_v7 = vpop.f32.mrf.mxu1 }
  0xa8   : > { %v475_v11 = vpop.f32.mrf.mxu3 }
  0xac   : > { %v581_v8 = vpop.f32.mrf.mxu0  ;;  %v422_v9 = vpop.f32.mrf.mxu2 }
  0xaf   : > { %v349_v10 = vpop.f32.mrf.mxu1 }
  0xb0   : > { %v478_v14 = vpop.f32.mrf.mxu3  ;;  %v350_v17 = vadd.f32 %v349_v10, %v308_v44 }
  0xb2   : > { %v430_v20 = vadd.f32 %v420_v3, %v350_v17 }
  0xb4   : > { %v583_v12 = vpop.f32.mrf.mxu0  ;;  %v425_v13 = vpop.f32.mrf.mxu2  ;;  %v483_v52 = vadd.f32 %v473_v4, %v430_v20 }
  0xb6   : > { %v591_v27 = vadd.f32 %v581_v8, %v483_v52 }
  0xb7   : > { %v351_v48 = vpop.f32.mrf.mxu1 }
  0xb8   : > { %v480_v18 = vpop.f32.mrf.mxu3  ;;  %v352_v22 = vadd.f32 %v351_v48, %v310_v54 }
  0xba   : > { %v431_v28 = vadd.f32 %v422_v9, %v352_v22 }
  0xbc   : > { %v586_v15 = vpop.f32.mrf.mxu0  ;;  %v427_v16 = vpop.f32.mrf.mxu2  ;;  %v484_v33 = vadd.f32 %v475_v11, %v431_v28 }
  0xbe   : > { %v592_v38 = vadd.f32 %v583_v12, %v484_v33 }
  0xbf   : > { %v354_v47 = vpop.f32.mrf.mxu1 }
  0xc0   : > { %v814_v25 = vpop.f32.mrf.mxu3  ;;  %v355_v32 = vadd.f32 %v354_v47, %v313_v2 }
  0xc2   : > { %v432_v36 = vadd.f32 %v425_v13, %v355_v32 }
  0xc4   : > { %v588_v19 = vpop.f32.mrf.mxu0  ;;  %v706_v24 = vpop.f32.mrf.mxu2  ;;  %v485_v5 = vadd.f32 %v478_v14, %v432_v36 }
  0xc6   : > { %v593_v50 = vadd.f32 %v586_v15, %v485_v5 }
  0xc7   : > { %v356_v21 = vpop.f32.mrf.mxu1 }
  0xc8   : > { %v816_v40 = vpop.f32.mrf.mxu3  ;;  %v357_v43 = vadd.f32 %v356_v21, %v315_v7 }
  0xca   : > { %v433_v51 = vadd.f32 %v427_v16, %v357_v43 }
  0xcc   : > { %v886_v30 = vpop.f32.mrf.mxu0  ;;  %v708_v37 = vpop.f32.mrf.mxu2  ;;  %v486_v61 = vadd.f32 %v480_v18, %v433_v51 }
  0xce   : > { %v594_v3 = vadd.f32 %v588_v19, %v486_v61 }
  0xcf   : > { %v653_v29 = vpop.f32.mrf.mxu1 }
  0xd0   : > { %v663_v31 = vadd.f32 %v653_v29, %v591_v27  ;;  %v819_v60 = vpop.f32.mrf.mxu3 }
  0xd2   : > { %v716_v35 = vadd.f32 %v706_v24, %v663_v31 }
  0xd4   : > { %v824_v59 = vadd.f32 %v814_v25, %v716_v35  ;;  %v888_v42 = vpop.f32.mrf.mxu0  ;;  %v711_v55 = vpop.f32.mrf.mxu2 }
  0xd6   : > { %v896_v39 = vadd.f32 %v886_v30, %v824_v59 }
  0xd7   : > { %v655_v34 = vpop.f32.mrf.mxu1 }
  0xd8   : > { %v904_v0 = vadd.f32 %v1211_v6, %v896_v39  ;;  %v664_v41 = vadd.f32 %v655_v34, %v592_v38  ;;  %v821_v48 = vpop.f32.mrf.mxu3 }
  0xda   : > { %vm908_vm7 = vcmp.ge.f32.partialorder %v904_v0, 0.0  ;;  %v912_v45 = vmul.f32 0.1, %v904_v0  ;;  %v717_v23 = vadd.f32 %v708_v37, %v664_v41 }
  0xdc   : > { %v916_v46 = vsel %vm908_vm7, %v904_v0, %v912_v45  ;;  %v825_v26 = vadd.f32 %v816_v40, %v717_v23  ;;  %v891_v1 = vpop.f32.mrf.mxu0  ;;  %v713_v10 = vpop.f32.mrf.mxu2 }
  0xdd   : > { %v920_v49 = vpack.c.bf16 %v916_v46, %v916_v46 }
  0xde   : > { %v897_v53 = vadd.f32 %v888_v42, %v825_v26 }
  0xdf   : > { %925 = vst.msk [vmem:[%s1482_s20] sm:$0xf] %vm924_vm8, %v920_v49  ;;  %v658_v56 = vpop.f32.mrf.mxu1 }
  0xe0   : > { %v905_v57 = vadd.f32 %v1211_v6, %v897_v53  ;;  %v665_v58 = vadd.f32 %v658_v56, %v593_v50 }
  0xe2   : > { %vm909_vm9 = vcmp.ge.f32.partialorder %v905_v57, 0.0  ;;  %v913_v62 = vmul.f32 0.1, %v905_v57  ;;  %v718_v63 = vadd.f32 %v711_v55, %v665_v58 }
  0xe4   : > { %v917_v44 = vsel %vm909_vm9, %v905_v57, %v913_v62  ;;  %v826_v2 = vadd.f32 %v819_v60, %v718_v63  ;;  %v893_v47 = vpop.f32.mrf.mxu0 }
  0xe5   : > { %v921_v54 = vpack.c.bf16 %v917_v44, %v917_v44 }
  0xe6   : > { %v898_v4 = vadd.f32 %v891_v1, %v826_v2 }
  0xe7   : > { %926 = vst.msk [vmem:[%s1482_s20 + $0x4] sm:$0xf] %vm924_vm8, %v921_v54  ;;  %v660_v7 = vpop.f32.mrf.mxu1 }
  0xe8   : > { %v906_v8 = vadd.f32 %v1211_v6, %v898_v4  ;;  %v666_v9 = vadd.f32 %v660_v7, %v594_v3 }
  0xea   : > { %vm910_vm10 = vcmp.ge.f32.partialorder %v906_v8, 0.0  ;;  %v914_v11 = vmul.f32 0.1, %v906_v8  ;;  %v719_v12 = vadd.f32 %v713_v10, %v666_v9 }
  0xec   : > { %v918_v13 = vsel %vm910_vm10, %v906_v8, %v914_v11  ;;  %v827_v14 = vadd.f32 %v821_v48, %v719_v12 }
  0xed   : > { %v922_v15 = vpack.c.bf16 %v918_v13, %v918_v13 }
  0xee   : > { %v899_v16 = vadd.f32 %v893_v47, %v827_v14 }
  0xef   : > { %927 = vst.msk [vmem:[%s1482_s20 + $0x8] sm:$0xf] %vm924_vm8, %v922_v15 }
  0xf0   : > { %v907_v17 = vadd.f32 %v1211_v6, %v899_v16 }
  0xf2   : > { %vm911_vm11 = vcmp.ge.f32.partialorder %v907_v17, 0.0  ;;  %v915_v18 = vmul.f32 0.1, %v907_v17 }
  0xf4   : > { %v919_v19 = vsel %vm911_vm11, %v907_v17, %v915_v18 }
  0xf5   : > { %v923_v20 = vpack.c.bf16 %v919_v19, %v919_v19 }
  0xf7   : > { %928 = vst.msk [vmem:[%s1482_s20 + $0xc] sm:$0xf] %vm924_vm8, %v923_v20 }
  0xf8 PF: > { %s13_s14 = sadd.s32 1, %s1234_s14   ;;  %s1509_s12 = smov %s1230_s13 }
  0xf9   : > { %p10_p5 = scmp.ge.s32.totalorder %s13_s14, 4   ;;  %s1510_s13 = smov %s1512_s15 }
  0xfb   :  { %12 = sbr.rel (!%p10_p5) target bundleno = 2 (0x2), region = 72 }

// kernel: _lambda_.5
= control target key start
LH: loop header
LB: loop body
LE: loop exit
PB: predicated region body
PF: predicated region fallthrough
CT: control target
= control target key end

     0   :  { %s1068_s12 = smov 0   ;;  %s1070_s13 = smov 0   ;;  %s1243_s0 = inlined_call_operand.vmem [shape: bf16[2,1,4,10,32], index: 0, kind: input, shape index: {}]   ;;  %s1244_s1 = inlined_call_operand.vmem [shape: bf16[9,32,16], index: 1, kind: input, shape index: {}]   ;;  %s1245_s2 = inlined_call_operand.vmem [shape: f32[1,16], index: 2, kind: input, shape index: {}]   ;;  %s1246_s3 = inlined_call_operand.vmem [shape: f32[2,1,16,16], index: 3, kind: output, shape index: {}]  }
   0x1   :  { %s1072_s14 = smov 0  }
   0x2 LB: > { %s25_s15 = sadd.s32 1, %s1042_s13  ;;  %p822_p0 = scmp.ge.s32.totalorder %s1046_s14, 1  ;;  %s1046_s14 = sphi %s1072_s14, %s13_s14   ;;  %s1042_s13 = sphi %s1070_s13, %s1252_s13   ;;  %s1038_s12 = sphi %s1068_s12, %s1251_s12  }
   0x3   : > { %p27_p1 = scmp.ge.s32.totalorder %s25_s15, 2  ;;  %p157_p2 = scmp.lt.s32.totalorder %s1046_s14, 3 }
   0x5   : > { %s1254_s15 = smov (%p27_p1, %s25_s15), 0  ;;  %p158_p3 = pnand %p822_p0, %p157_p2 }
   0x6   : > { %p189_p4 = scmp.lt.s32.totalorder (!%p158_p3), %s1038_s12, 1 }
   0x7   : > { %161 = sbr.rel (%p158_p3) target bundleno = 209 (0xd1), region = 32 }
   0xc   : > { %v984_v0 = vld [vmem:[%s1244_s1 + $0x28] sm:$0xff]  ;;  %v987_v1 = vld [vmem:[%s1244_s1 + $0x38] sm:$0xff]  ;;  %v983_v4 = vld [vmem:[%s1244_s1 + $0x20] sm:$0xff]  ;;  %s1256_s12 = smov (!%p189_p4, %s1038_s12), 1  ;;  %vm325_vm0 = vcmask 1042432   ;;  %vm326_vm1 = vcmask 1046532  }
   0xd   : > { %v982_v2 = vld [vmem:[%s1244_s1 + $0x18] sm:$0xff]  ;;  %v980_v3 = vld [vmem:[%s1244_s1 + $0x8] sm:$0xff]  ;;  %365 = vmatpush.bf16.msra.mxu2 %v984_v0  ;;  %409 = vmatpush.bf16.msra.mxu3 %v987_v1  ;;  %v986_v5 = vld [vmem:[%s1244_s1 + $0x30] sm:$0xff]  ;;  %s976_s5 = sshll.u32 %s1256_s12, 5  ;;  %vm267_vm2 = vcmask 261120   ;;  %s977_s8 = sshll.u32 %s1256_s12, 4 }
   0xe   : > { %277 = vmatpush.bf16.msra.mxu0 %v982_v2  ;;  %311 = vmatpush.bf16.msra.mxu1 %v980_v3  ;;  %v981_v6 = vld [vmem:[%s1244_s1 + $0x10] sm:$0xff]  ;;  %v979_v7 = vld [vmem:[%s1244_s1] sm:$0xff]  ;;  %v989_v8 = vld [vmem:[%s1244_s1 + $0x48] sm:$0xff]  ;;  %s1122_s16 = scalar_lea.vmem %s1243_s0, %s976_s5  ;;  %vm216_vm4 = vsmask.f32 3328  ;;  %s206_s11 = scalar_lea.vmem %s1246_s3, %s977_s8  ;;  %vm723_vm8 = vcmask 130048  }
   0xf   : > { %v994_v9 = vld [vmem:[%s1244_s1 + $0x68] sm:$0xff]  ;;  %vm1124_vm3 = vmor %vm325_vm0, %vm326_vm1  ;;  %v996_v11 = vld [vmem:[%s1244_s1 + $0x78] sm:$0xff]  ;;  %vm217_vm5 = vsmask.f32 7440 }
  0x10   : > { %v991_v12 = vld [vmem:[%s1244_s1 + $0x58] sm:$0xff]  ;;  %v214_v13 = vld [vmem:[%s1122_s16 + $0x4] sm:$0x1]  ;;  %v215_v14 = vld [vmem:[%s1122_s16 + $0xc] sm:$0x1] }
  0x11   : > { %366 = vmatpush.bf16.msra.mxu2 %v983_v4  ;;  %410 = vmatpush.bf16.msra.mxu3 %v986_v5  ;;  %v319_v15 = vld [vmem:[%s1122_s16] sm:$0xe]  ;;  %v320_v18 = vld [vmem:[%s1122_s16 + $0x8] sm:$0xe]  ;;  %v330_v20 = vrot.slane %v214_v13, 5  ;;  %v334_v21 = vrot.slane %v215_v14, 5  ;;  %vm1170_vm6 = vmor %vm216_vm4, %vm217_vm5 }
  0x12   : > { %v988_v16 = vld [vmem:[%s1244_s1 + $0x40] sm:$0xff]  ;;  %v853_v19 = vrot.slane %v319_v15, 9  ;;  %278 = vmatpush.bf16.msra.mxu0 %v981_v6  ;;  %312 = vmatpush.bf16.msra.mxu1 %v979_v7  ;;  %v995_v22 = vld [vmem:[%s1244_s1 + $0x70] sm:$0xff]  ;;  %v854_v23 = vrot.slane %v320_v18, 9  ;;  %v876_v24 = vld [vmem:[%s1122_s16 + $0x8] sm:$0xf] }
  0x13   : > { %v993_v17 = vld [vmem:[%s1244_s1 + $0x60] sm:$0xff]  ;;  %v985_v25 = vld [vmem:[%s1122_s16 + $0xc] sm:$0xf0]  ;;  %v209_v30 = vld [vmem:[%s1122_s16 + $0x8] sm:$0xf]  ;;  %v229_v31 = vshll.u32 %v214_v13, 16 }
  0x14   : > { %v990_v26 = vld [vmem:[%s1244_s1 + $0x50] sm:$0xff]  ;;  %v331_v27 = vsel %vm1124_vm3, %v853_v19, %v330_v20  ;;  %v877_v28 = vor.u32 %v985_v25, %v876_v24  ;;  %v208_v29 = vld [vmem:[%s1122_s16] sm:$0xf]  ;;  %v243_v32 = vshll.u32 %v215_v14, 16  ;;  %v335_v33 = vsel %vm1124_vm3, %v854_v23, %v334_v21  ;;  %v978_v38 = vld [vmem:[%s1122_s16 + $0x4] sm:$0xf0] }
  0x15   : > { %577 = vmatpush.bf16.msrb.mxu2 %v994_v9  ;;  %648 = vmatpush.bf16.msrb.mxu3 %v996_v11  ;;  %v341_v34 = vunpack.c.l.b16 %v331_v27  ;;  %v220_v35 = vshrl.u32 %v208_v29, 16  ;;  %v223_v36 = vshll.u32 %v208_v29, 16  ;;  %v842_v37 = vld [vmem:[%s1122_s16] sm:$0xf]  ;;  %v342_v39 = vunpack.c.l.b16 %v335_v33  ;;  %v887_v45 = vld [vmem:[%s1122_s16 + $0x8] sm:$0xf] }
  0x16   : > { %480 = vmatpush.bf16.msrb.mxu0 %v989_v8  ;;  %533 = vmatpush.bf16.msrb.mxu1 %v991_v12  ;;  %v234_v40 = vshrl.u32 %v209_v30, 16  ;;  %v237_v41 = vshll.u32 %v209_v30, 16  ;;  %v843_v44 = vor.u32 %v978_v38, %v842_v37  ;;  %v231_v47 = vrot.slane %v229_v31, 5  ;;  %v889_v50 = vld [vmem:[%s1122_s16 + $0x10] sm:$0xf]  ;;  %v998_v23 = vld [vmem:[%s1244_s1 + $0x88] sm:$0xff] }
  0x17   : > { %886 = vmatmul.msk.bf16.vlgmr.msra.gmra.mxu3 %vm267_vm2, %v877_v28  ;;  %v222_v42 = vrot.slane %v220_v35, 4  ;;  %v225_v43 = vrot.slane %v223_v36, 5  ;;  %v343_v46 = vpack.c.b16 %v342_v39, %v341_v34  ;;  %v245_v52 = vrot.slane %v243_v32, 5  ;;  %v1165_v53 = vld [vmem:[%s1122_s16 + $0xc] sm:$0x1] }
  0x18   : > { %v236_v48 = vrot.slane %v234_v40, 4  ;;  %v239_v49 = vrot.slane %v237_v41, 5  ;;  %852 = vmatmul.msk.bf16.vlgmr.msra.gmra.mxu1 %vm267_vm2, %v843_v44  ;;  %v424_v54 = vshrl.u32 %v887_v45, 16  ;;  %v427_v55 = vshll.u32 %v887_v45, 16  ;;  %v890_v58 = vld [vmem:[%s1122_s16 + $0x14] sm:$0x1] }
  0x19   : > { %578 = vmatpush.bf16.msrb.mxu2 %v993_v17  ;;  %649 = vmatpush.bf16.msrb.mxu3 %v995_v22  ;;  %v226_v51 = vor.u32 %v225_v43, %v222_v42  ;;  %v438_v59 = vshrl.u32 %v889_v50, 16  ;;  %v441_v60 = vshll.u32 %v889_v50, 16  ;;  %v940_v61 = vld [vmem:[%s1122_s16 + $0x10] sm:$0xf]  ;;  %v1177_v1 = vld [vmem:[%s1122_s16 + $0x14] sm:$0x1] }
  0x1a   : > { %481 = vmatpush.bf16.msrb.mxu0 %v988_v16  ;;  %534 = vmatpush.bf16.msrb.mxu1 %v990_v26  ;;  %v240_v57 = vor.u32 %v239_v49, %v236_v48  ;;  %v426_v63 = vrot.slane %v424_v54, 4  ;;  %v429_v0 = vrot.slane %v427_v55, 5  ;;  %v433_v3 = vshll.u32 %v1165_v53, 16  ;;  %v942_v8 = vld [vmem:[%s1122_s16 + $0x18] sm:$0xf]  ;;  %v997_v43 = vld [vmem:[%s1244_s1 + $0x80] sm:$0xff] }
  0x1b   : > { %867 = vmatmul.msk.bf16.vlgmr.msra.gmra.mxu2 %vm267_vm2, %v343_v46  ;;  %v227_v62 = vrot.slane %v226_v51, 4  ;;  %v440_v4 = vrot.slane %v438_v59, 4  ;;  %v443_v5 = vrot.slane %v441_v60, 5  ;;  %v447_v7 = vshll.u32 %v890_v58, 16  ;;  %v1186_v15 = vld [vmem:[%s1122_s16 + $0x1c] sm:$0x1] }
  0x1c   : > { %v241_v2 = vrot.slane %v240_v57, 4  ;;  %v592_v9 = vshrl.u32 %v940_v61, 16  ;;  %v595_v11 = vshll.u32 %v940_v61, 16  ;;  %v430_v14 = vor.u32 %v429_v0, %v426_v63  ;;  %v929_v25 = vld [vmem:[%s1122_s16 + $0x10] sm:$0xf] }
  0x1d   : > { %v232_v6 = vsel %vm1170_vm6, %v227_v62, %v231_v47  ;;  %v601_v16 = vshll.u32 %v1177_v1, 16  ;;  %v444_v18 = vor.u32 %v443_v5, %v440_v4  ;;  %v606_v21 = vshrl.u32 %v942_v8, 16  ;;  %v904_v29 = vld [vmem:[%s1122_s16 + $0x8] sm:$0xe]  ;;  %v905_v33 = vld [vmem:[%s1122_s16 + $0x10] sm:$0xe] }
  0x1e   : > { %v246_v12 = vsel %vm1170_vm6, %v241_v2, %v245_v52  ;;  %v252_v13 = vunpack.c.l.b16 %v232_v6  ;;  %v594_v19 = vrot.slane %v592_v9, 4  ;;  %v597_v20 = vrot.slane %v595_v11, 5  ;;  %v992_v34 = vld [vmem:[%s1122_s16 + $0x14] sm:$0xf0]  ;;  %v957_v0 = vld [vmem:[%s1122_s16 + $0x10] sm:$0xe] }
  0x1f   : > { %v253_v17 = vunpack.c.l.b16 %v246_v12  ;;  %v609_v22 = vshll.u32 %v942_v8, 16  ;;  %v603_v27 = vrot.slane %v601_v16, 5  ;;  %v615_v28 = vshll.u32 %v1186_v15, 16  ;;  %v958_v2 = vld [vmem:[%s1122_s16 + $0x18] sm:$0xe] }
  0x20   : > { %v598_v26 = vor.u32 %v597_v20, %v594_v19  ;;  %v435_v30 = vrot.slane %v433_v3, 5  ;;  %v608_v31 = vrot.slane %v606_v21, 4  ;;  %v431_v35 = vrot.slane %v430_v14, 4 }
  0x21   : > { %v254_v24 = vpack.c.b16 %v253_v17, %v252_v13  ;;  %v611_v32 = vrot.slane %v609_v22, 5  ;;  %v445_v36 = vrot.slane %v444_v18, 4  ;;  %v449_v37 = vrot.slane %v447_v7, 5 }
  0x22   : > { %v599_v38 = vrot.slane %v598_v26, 4  ;;  %v617_v40 = vrot.slane %v615_v28, 5  ;;  %v906_v41 = vrot.slane %v904_v29, 9  ;;  %v498_v42 = vrot.slane %v1165_v53, 5 }
  0x23   : > { %839 = vmatmul.msk.bf16.vlgmr.msra.gmra.mxu0 %vm267_vm2, %v254_v24  ;;  %v612_v39 = vor.u32 %v611_v32, %v608_v31  ;;  %v907_v45 = vrot.slane %v905_v33, 9  ;;  %v502_v46 = vrot.slane %v890_v58, 5  ;;  %v930_v47 = vor.u32 %v992_v34, %v929_v25 }
  0x24   : > { %701 = vmatpush.bf16.msra.mxu0 %v998_v23  ;;  %v604_v44 = vsel %vm1170_vm6, %v599_v38, %v603_v27  ;;  %v499_v49 = vsel %vm1124_vm3, %v906_v41, %v498_v42  ;;  %v436_v53 = vsel %vm1170_vm6, %v431_v35, %v435_v30  ;;  %v450_v54 = vsel %vm1170_vm6, %v445_v36, %v449_v37  ;;  %v1023_v36 = vld [vmem:[%s1245_s2] ss:$0 sm:$0xff] }
  0x25   : > { %v613_v48 = vrot.slane %v612_v39, 4  ;;  %v624_v50 = vunpack.c.l.b16 %v604_v44  ;;  %v503_v51 = vsel %vm1124_vm3, %v907_v45, %v502_v46  ;;  %v509_v52 = vunpack.c.l.b16 %v499_v49 }
  0x26   : > { %v510_v57 = vunpack.c.l.b16 %v503_v51  ;;  %v456_v60 = vunpack.c.l.b16 %v436_v53  ;;  %v457_v61 = vunpack.c.l.b16 %v450_v54  ;;  %v666_v56 = vrot.slane %v1177_v1, 5 }
  0x27   : > { %v618_v55 = vsel %vm1170_vm6, %v613_v48, %v617_v40  ;;  %v670_v3 = vrot.slane %v1186_v15, 5  ;;  %v959_v4 = vrot.slane %v957_v0, 9  ;;  %v960_v5 = vrot.slane %v958_v2, 9 }
  0x28   : > { %702 = vmatpush.bf16.msra.mxu0 %v997_v43  ;;  %v625_v58 = vunpack.c.l.b16 %v618_v55  ;;  %v511_v59 = vpack.c.b16 %v510_v57, %v509_v52  ;;  %v458_v63 = vpack.c.b16 %v457_v61, %v456_v60 }
  0x29   : > { %v667_v6 = vsel %vm1124_vm3, %v959_v4, %v666_v56  ;;  %v671_v7 = vsel %vm1124_vm3, %v960_v5, %v670_v3 }
  0x2a   : > { %v626_v62 = vpack.c.b16 %v625_v58, %v624_v50  ;;  %920 = vmatmul.msk.bf16.vlgmr.msrb.gmra.mxu1 %vm267_vm2, %v511_v59  ;;  %v677_v8 = vunpack.c.l.b16 %v667_v6  ;;  %v678_v9 = vunpack.c.l.b16 %v671_v7 }
  0x2b   : > { %939 = vmatmul.msk.bf16.vlgmr.msrb.gmra.mxu2 %vm267_vm2, %v930_v47 }
  0x2c   : > { %956 = vmatmul.msk.bf16.vlgmr.msrb.gmra.mxu3 %vm267_vm2, %v626_v62  ;;  %v679_v11 = vpack.c.b16 %v678_v9, %v677_v8 }
  0x33   : > { %903 = vmatmul.msk.bf16.vlgmr.msrb.gmra.mxu0 %vm267_vm2, %v458_v63 }
  0x43   : > { %973 = vmatmul.msk.bf16.vlgmr.msra.gmra.mxu0 %vm267_vm2, %v679_v11 }
  0x95   : > { %v314_v13 = vpop.f32.mrf.mxu1 }
  0x9a   : > { %v412_v16 = vpop.f32.mrf.mxu3 }
  0x9d   : > { %v316_v15 = vpop.f32.mrf.mxu1 }
  0x9e   : > { %v368_v14 = vpop.f32.mrf.mxu2 }
  0xa0   : > { %v280_v12 = vpop.f32.mrf.mxu0 }
  0xa1   : > { %v315_v17 = vadd.f32 %v314_v13, %v280_v12 }
  0xa2   : > { %v414_v23 = vpop.f32.mrf.mxu3 }
  0xa3   : > { %v373_v18 = vadd.f32 %v368_v14, %v315_v17 }
  0xa5   : > { %v417_v21 = vadd.f32 %v412_v16, %v373_v18 }
  0xa6   : > { %v370_v19 = vpop.f32.mrf.mxu2 }
  0xa7   : > { %v536_v10 = vpop.f32.mrf.mxu1 }
  0xa8   : > { %v282_v1 = vpop.f32.mrf.mxu0 }
  0xa9   : > { %v317_v22 = vadd.f32 %v316_v15, %v282_v1 }
  0xab   : > { %v374_v25 = vadd.f32 %v370_v19, %v317_v22 }
  0xad   : > { %v418_v29 = vadd.f32 %v414_v23, %v374_v25 }
  0xae   : > { %v580_v26 = vpop.f32.mrf.mxu2 }
  0xaf   : > { %v651_v30 = vpop.f32.mrf.mxu3  ;;  %v538_v33 = vpop.f32.mrf.mxu1 }
  0xb0   : > { %v483_v20 = vpop.f32.mrf.mxu0 }
  0xb1   : > { %v488_v24 = vadd.f32 %v483_v20, %v417_v21 }
  0xb3   : > { %v541_v27 = vadd.f32 %v536_v10, %v488_v24 }
  0xb5   : > { %v585_v31 = vadd.f32 %v580_v26, %v541_v27 }
  0xb6   : > { %v582_v37 = vpop.f32.mrf.mxu2 }
  0xb7   : > { %v656_v34 = vadd.f32 %v651_v30, %v585_v31  ;;  %v653_v42 = vpop.f32.mrf.mxu3 }
  0xb8   : > { %v485_v28 = vpop.f32.mrf.mxu0 }
  0xb9   : > { %v489_v32 = vadd.f32 %v485_v28, %v418_v29 }
  0xbb   : > { %v542_v35 = vadd.f32 %v538_v33, %v489_v32 }
  0xbd   : > { %v586_v40 = vadd.f32 %v582_v37, %v542_v35 }
  0xbf   : > { %v657_v44 = vadd.f32 %v653_v42, %v586_v40 }
  0xc0   : > { %v704_v38 = vpop.f32.mrf.mxu0 }
  0xc1   : > { %v709_v39 = vadd.f32 %v704_v38, %v656_v34 }
  0xc3   : > { %v715_v41 = vadd.f32 %v1023_v36, %v709_v39 }
  0xc5   : > { %vm717_vm7 = vcmp.ge.f32.partialorder %v715_v41, 0.0  ;;  %v719_v43 = vmul.f32 0.1, %v715_v41 }
  0xc7   : > { %v721_v45 = vsel %vm717_vm7, %v715_v41, %v719_v43 }
  0xc8   : > { %724 = vst.msk [vmem:[%s206_s11] sm:$0xff] %vm723_vm8, %v721_v45  ;;  %v706_v46 = vpop.f32.mrf.mxu0 }
  0xc9   : > { %v710_v47 = vadd.f32 %v706_v46, %v657_v44 }
  0xcb   : > { %v716_v48 = vadd.f32 %v1023_v36, %v710_v47 }
  0xcd   : > { %vm718_vm9 = vcmp.ge.f32.partialorder %v716_v48, 0.0  ;;  %v720_v49 = vmul.f32 0.1, %v716_v48 }
  0xcf   : > { %v722_v50 = vsel %vm718_vm9, %v716_v48, %v720_v49 }
  0xd0   : > { %725 = vst.msk [vmem:[%s206_s11 + $0x8] sm:$0xff] %vm723_vm8, %v722_v50 }
  0xd1 PF: > { %s13_s14 = sadd.s32 1, %s1046_s14   ;;  %s1251_s12 = smov %s1042_s13 }
  0xd2   : > { %p10_p5 = scmp.ge.s32.totalorder %s13_s14, 4   ;;  %s1252_s13 = smov %s1254_s15 }
  0xd4   :  { %12 = sbr.rel (!%p10_p5) target bundleno = 2 (0x2), region = 72 }

</bundles_post_ra>
